<compile_context>
chip_gen: v6e
topology: v6e:2x2x1
jax: 0.10.0
libtpu: 0.0.40
codegen_flags: <defaults>
</compile_context>

<pallas_src>
import functools
import math

import jax
import jax.numpy as jnp
from jax.experimental import pallas as pl
from jax.experimental.pallas import tpu as pltpu

# ----------------------------- model configuration -----------------------------
SEQ = 32          # sequence length (fixed by the module: head = Linear(768 * 32, emb))
HIDDEN = 768      # BERT hidden size (fixed by the module)
FFN = 3072        # BERT intermediate size
HEADS = 12
VOCAB = 512       # small synthetic vocab
EMB = 128         # embedding_size
CLASSES = 256     # num_of_classes
MARGIN = 0.5
SCALE = 64.0


# ----------------------------- Pallas kernel: tiled linear (X @ W + b [+ GELU]) -----------------------------
def _linear_kernel(x_ref, w_ref, b_ref, o_ref, *, activation):
    k = pl.program_id(1)  # K (reduction) is the innermost grid axis

    @pl.when(k == 0)
    def _():
        o_ref[...] = jnp.zeros_like(o_ref)

    # bf16 x bf16 -> f32 accumulate directly into the resident output block (no scratch).
    o_ref[...] += jnp.dot(x_ref[...], w_ref[...], preferred_element_type=jnp.float32)

    @pl.when(k == pl.num_programs(1) - 1)
    def _():
        y = o_ref[...] + b_ref[...]
        if activation == "gelu":
            # tanh-approx GELU: elementwise + EUP tanh, effectively free in this mem-bound kernel
            y = jax.nn.gelu(y, approximate=True)
        o_ref[...] = y


def _pick_tile(dim, prefs):
    """Largest preferred tile (multiple of 128) that divides `dim` with >=2 grid steps."""
    for cand in prefs:
        if dim % cand == 0 and dim // cand >= 2:
            return cand
    return dim  # fall back to the full dimension (always legal)


def pallas_linear(x, w, b, *, activation=None):
    """x: (M, K), w: (K, N), b: (N,) -> (M, N) f32 = x @ w + b (optionally GELU-fused)."""
    M, K = x.shape
    K2, N = w.shape
    assert K == K2, (K, K2)

    tn = _pick_tile(N, (1152, 1024, 768, 512, 384, 256, 128))
    tk = _pick_tile(K, (4096, 2048, 1024, 768, 512, 384, 256, 128))
    n_n, n_k = N // tn, K // tk

    x_bf = x.astype(jnp.bfloat16)
    w_bf = w.astype(jnp.bfloat16)
    b2 = b.reshape(1, N).astype(jnp.float32)

    # VMEM budget from the actual block footprint (double buffers) with generous slack,
    # capped well below v7x's 64 MiB physical VMEM.
    blk_bytes = 2 * (M * tk * 2 + tk * tn * 2 + tn * 4 + M * tn * 4)
    vmem_limit = int(min(32 << 20, max(8 << 20, 4 * blk_bytes)))

    kern = functools.partial(_linear_kernel, activation=activation)
    return pl.pallas_call(
        kern,
        out_shape=jax.ShapeDtypeStruct((M, N), jnp.float32),
        grid_spec=pltpu.PrefetchScalarGridSpec(
            num_scalar_prefetch=0,
            grid=(n_n, n_k),
            in_specs=[
                pl.BlockSpec((M, tk), lambda n, k: (0, k)),
                pl.BlockSpec((tk, tn), lambda n, k: (k, n)),
                pl.BlockSpec((1, tn), lambda n, k: (0, n)),
            ],
            out_specs=pl.BlockSpec((M, tn), lambda n, k: (0, n)),
        ),
        compiler_params=pltpu.CompilerParams(
            dimension_semantics=("parallel", "arbitrary"),
            vmem_limit_bytes=vmem_limit,
        ),
    )(x_bf, w_bf, b2)


# ----------------------------- Pallas kernel: ArcFace head -----------------------------
def _arcface_kernel(lbl_ref, emb_ref, w_ref, out_ref, *, cos_m, sin_m, th, mm, scale, batch):
    x = emb_ref[...]                      # (B, E) f32
    w = w_ref[...]                        # (E, C) f32 (pre-transposed in glue)
    # F.normalize(p=2, eps=1e-12): rows of x, columns of w (= rows of the torch (C,E) weight)
    xn = x / jnp.maximum(jnp.sqrt(jnp.sum(x * x, axis=1, keepdims=True)), 1e-12)
    wn = w / jnp.maximum(jnp.sqrt(jnp.sum(w * w, axis=0, keepdims=True)), 1e-12)
    cosine = jnp.dot(xn, wn, preferred_element_type=jnp.float32)       # (B, C)
    # clamp guards against sqrt of a tiny negative from fp rounding (|cos| <= 1 analytically)
    sine = jnp.sqrt(jnp.maximum(1.0 - cosine * cosine, 0.0))
    phi = cosine * cos_m - sine * sin_m
    phi = jnp.where(cosine > th, phi, cosine - mm)
    # one-hot from SMEM labels (scalar prefetch) -- no padded VMEM tile / extra DMA pipeline
    col = jax.lax.broadcasted_iota(jnp.int32, cosine.shape, 1)
    row = jax.lax.broadcasted_iota(jnp.int32, cosine.shape, 0)
    one_hot = jnp.zeros(cosine.shape, jnp.float32)
    for bidx in range(batch):             # batch is tiny and static
        hit = (row == bidx) & (col == lbl_ref[bidx])
        one_hot = jnp.where(hit, 1.0, one_hot)
    out_ref[...] = (one_hot * phi + (1.0 - one_hot) * cosine) * scale


def pallas_arcface(emb, weight, labels, *, scale_factor, margin):
    B, E = emb.shape
    C, E2 = weight.shape
    assert E == E2
    kern = functools.partial(
        _arcface_kernel,
        cos_m=math.cos(margin),
        sin_m=math.sin(margin),
        th=math.cos(math.pi - margin),
        mm=math.sin(math.pi - margin) * margin,
        scale=scale_factor,
        batch=B,
    )
    lbl = labels.reshape(-1).astype(jnp.int32)           # (B,) -> SMEM via scalar prefetch
    w_t = weight.astype(jnp.float32).T                   # (E, C): no in-kernel transpose
    return pl.pallas_call(
        kern,
        out_shape=jax.ShapeDtypeStruct((B, C), jnp.float32),
        grid_spec=pltpu.PrefetchScalarGridSpec(
            num_scalar_prefetch=1,
            grid=(1,),
            in_specs=[
                pl.BlockSpec((B, E), lambda i, lbl: (0, 0)),
                pl.BlockSpec((E, C), lambda i, lbl: (0, 0)),
            ],
            out_specs=pl.BlockSpec((B, C), lambda i, lbl: (0, 0)),
        ),
        compiler_params=pltpu.CompilerParams(
            dimension_semantics=("arbitrary",),
        ),
    )(lbl, emb.astype(jnp.float32), w_t)


# ----------------------------- BERT-style feature extractor (glue + Pallas matmuls) -----------------------------
def _layer_norm(x, g, b, eps=1e-12):
    mu = jnp.mean(x, axis=-1, keepdims=True)
    var = jnp.mean((x - mu) ** 2, axis=-1, keepdims=True)
    return (x - mu) * jax.lax.rsqrt(var + eps) * g + b


def bert_lite_encoder(params, input_ids, attention_mask):
    # TODO(synk): BertModel.from_pretrained (pretrained checkpoint) cannot be reproduced here;
    # substituted with a deterministic single-layer BERT-style encoder producing the same
    # last_hidden_state shape (B, SEQ, 768); its dense projections run in the Pallas linear kernel.
    B, S = input_ids.shape
    H, NH = HIDDEN, HEADS
    DH = H // NH

    h = params["tok_emb"][input_ids] + params["pos_emb"][None, :S, :]
    h = _layer_norm(h, params["ln_emb_g"], params["ln_emb_b"])

    x2 = h.reshape(B * S, H)
    # fused QKV: one weight-streaming pass / kernel launch instead of three
    qkv = pallas_linear(x2, params["w_qkv"], params["b_qkv"])          # (B*S, 3H)
    q = qkv[:, 0 * H:1 * H].reshape(B, S, NH, DH).transpose(0, 2, 1, 3)
    k = qkv[:, 1 * H:2 * H].reshape(B, S, NH, DH).transpose(0, 2, 1, 3)
    v = qkv[:, 2 * H:3 * H].reshape(B, S, NH, DH).transpose(0, 2, 1, 3)

    scores = jnp.einsum("bhqd,bhkd->bhqk", q, k) / math.sqrt(DH)
    addmask = (1.0 - attention_mask.astype(jnp.float32))[:, None, None, :] * -1e9
    attn = jax.nn.softmax(scores + addmask, axis=-1)
    ctx = jnp.einsum("bhqk,bhkd->bhqd", attn, v).transpose(0, 2, 1, 3).reshape(B * S, H)

    o = pallas_linear(ctx, params["wo"], params["bo"]).reshape(B, S, H)
    h = _layer_norm(h + o, params["ln1_g"], params["ln1_b"])

    # FFN: GELU fused into the FFN1 kernel epilogue (avoids writing the (B*S, 3072) activation to HBM)
    f = pallas_linear(h.reshape(B * S, H), params["w1"], params["b1"], activation="gelu")
    f = pallas_linear(f, params["w2"], params["b2"]).reshape(B, S, H)
    h = _layer_norm(h + f, params["ln2_g"], params["ln2_b"])
    return h  # last_hidden_state (B, S, H)


# ----------------------------- NamesRecognition forward -----------------------------
def names_recognition_forward(params, input_ids, attention_mask, labels=None):
    features = bert_lite_encoder(params, input_ids, attention_mask)    # (B, S, 768)
    features = features.reshape(features.shape[0], -1)                 # Flatten -> (B, 768*32)
    emb = pallas_linear(features, params["head_w"], params["head_b"])  # (B, EMB)
    if labels is None:
        return emb
    output = pallas_arcface(emb, params["arc_w"], labels, scale_factor=SCALE, margin=MARGIN)
    return emb, output


# ----------------------------- deterministic parameter init -----------------------------
def _xavier(key, shape):
    fan_in, fan_out = shape[0], shape[1]
    lim = math.sqrt(6.0 / (fan_in + fan_out))
    return jax.random.uniform(key, shape, jnp.float32, -lim, lim)


def init_params(key):
    ks = jax.random.split(key, 16)
    H = HIDDEN
    w_qkv = jnp.concatenate(
        [_xavier(ks[2], (H, H)), _xavier(ks[3], (H, H)), _xavier(ks[4], (H, H))], axis=1
    )  # (768, 2304): fused Q/K/V projection weight
    p = {
        "tok_emb": 0.02 * jax.random.normal(ks[0], (VOCAB, HIDDEN), jnp.float32),
        "pos_emb": 0.02 * jax.random.normal(ks[1], (SEQ, HIDDEN), jnp.float32),
        "ln_emb_g": jnp.ones((HIDDEN,), jnp.float32),
        "ln_emb_b": jnp.zeros((HIDDEN,), jnp.float32),
        "w_qkv": w_qkv, "b_qkv": jnp.zeros((3 * HIDDEN,), jnp.float32),
        "wo": _xavier(ks[5], (HIDDEN, HIDDEN)), "bo": jnp.zeros((HIDDEN,), jnp.float32),
        "ln1_g": jnp.ones((HIDDEN,), jnp.float32), "ln1_b": jnp.zeros((HIDDEN,), jnp.float32),
        "w1": _xavier(ks[6], (HIDDEN, FFN)), "b1": jnp.zeros((FFN,), jnp.float32),
        "w2": _xavier(ks[7], (FFN, HIDDEN)), "b2": jnp.zeros((HIDDEN,), jnp.float32),
        "ln2_g": jnp.ones((HIDDEN,), jnp.float32), "ln2_b": jnp.zeros((HIDDEN,), jnp.float32),
        # head: nn.Linear(768*32, EMB) -- stored as (in, out)
        "head_w": _xavier(ks[8], (HIDDEN * SEQ, EMB)),
        "head_b": jnp.zeros((EMB,), jnp.float32),
        # ArcFace weight: (num_classes, embedding_size), xavier_uniform like the module
        "arc_w": _xavier(ks[9], (CLASSES, EMB)),
    }
    return p


if __name__ == "__main__":
    root = jax.random.PRNGKey(0)
    pkey, ikey, lkey = jax.random.split(root, 3)

    params = init_params(pkey)

    B = 2
    input_ids = jax.random.randint(ikey, (B, SEQ), 0, VOCAB, dtype=jnp.int32)
    attention_mask = jnp.ones((B, SEQ), dtype=jnp.int32)
    labels = jax.random.randint(lkey, (B,), 0, CLASSES, dtype=jnp.int32)

    emb, logits = names_recognition_forward(params, input_ids, attention_mask, labels)
    emb, logits = jax.block_until_ready((emb, logits))

    assert emb.shape == (B, EMB) and logits.shape == (B, CLASSES)
    assert bool(jnp.all(jnp.isfinite(emb))) and bool(jnp.all(jnp.isfinite(logits)))
    print("KERNEL_OK")
</pallas_src>

<mosaic_0001>
module attributes {stable_mosaic.version = 11 : i64} {
  func.func @_linear_kernel(%arg0: i32, %arg1: i32, %arg2: memref<64x384xbf16, #tpu.memory_space<vmem>>, %arg3: memref<384x1152xbf16, #tpu.memory_space<vmem>>, %arg4: memref<1x1152xf32, #tpu.memory_space<vmem>>, %arg5: memref<64x1152xf32, #tpu.memory_space<vmem>>) attributes {dimension_semantics = [#tpu.dimension_semantics<parallel>, #tpu.dimension_semantics<arbitrary>], iteration_bounds = array<i64: 2, 2>, scalar_prefetch = 0 : i64, scratch_operands = 0 : i64, tpu.core_type = #tpu.core_type<tc>, window_params = [{transform_indices = @transform_0, window_bounds = array<i64: 64, 384>}, {transform_indices = @transform_1, window_bounds = array<i64: 384, 1152>}, {transform_indices = @transform_2, window_bounds = array<i64: 1, 1152>}, {transform_indices = @transform_3, window_bounds = array<i64: 64, 1152>}]} {
    %c0_i32 = arith.constant 0 : i32
    %0 = arith.cmpi eq, %arg1, %c0_i32 : i32
    %1 = arith.extui %0 : i1 to i32
    %c0_i32_0 = arith.constant 0 : i32
    %2 = arith.cmpi ne, %1, %c0_i32_0 : i32
    scf.if %2 {
      %cst_9 = arith.constant 0.000000e+00 : f32
      %12 = vector.broadcast %cst_9 : f32 to vector<64x1152xf32>
      %c0_10 = arith.constant 0 : index
      %c0_11 = arith.constant 0 : index
      %13 = vector.load %arg5[%c0_10, %c0_11] : memref<64x1152xf32, #tpu.memory_space<vmem>>, vector<64x1152xf32>
      tpu.vector_store %arg5[%c0_10, %c0_11], %12 {strides = array<i32>} : memref<64x1152xf32, #tpu.memory_space<vmem>>, vector<64x1152xf32>,
    } else {
    }
    %c0 = arith.constant 0 : index
    %c0_1 = arith.constant 0 : index
    %3 = vector.load %arg5[%c0, %c0_1] : memref<64x1152xf32, #tpu.memory_space<vmem>>, vector<64x1152xf32>
    %c0_2 = arith.constant 0 : index
    %c0_3 = arith.constant 0 : index
    %4 = vector.load %arg2[%c0_2, %c0_3] : memref<64x384xbf16, #tpu.memory_space<vmem>>, vector<64x384xbf16>
    %c0_4 = arith.constant 0 : index
    %c0_5 = arith.constant 0 : index
    %5 = vector.load %arg3[%c0_4, %c0_5] : memref<384x1152xbf16, #tpu.memory_space<vmem>>, vector<384x1152xbf16>
    %cst = arith.constant dense<0.000000e+00> : vector<64x1152xf32>
    %6 = tpu.matmul %4, %5, %cst {dimension_numbers = #tpu.dot_dimension_numbers<[1], [0], [0], [1], [0, 0, 1, 1], [], []>} : vector<64x384xbf16>, vector<384x1152xbf16>, vector<64x1152xf32> -> vector<64x1152xf32>
    %7 = arith.addf %3, %6 : vector<64x1152xf32>
    %c0_6 = arith.constant 0 : index
    %c0_7 = arith.constant 0 : index
    %8 = vector.load %arg5[%c0_6, %c0_7] : memref<64x1152xf32, #tpu.memory_space<vmem>>, vector<64x1152xf32>
    tpu.vector_store %arg5[%c0_6, %c0_7], %7 {strides = array<i32>} : memref<64x1152xf32, #tpu.memory_space<vmem>>, vector<64x1152xf32>,
    %c1_i32 = arith.constant 1 : i32
    %9 = arith.cmpi eq, %arg1, %c1_i32 : i32
    %10 = arith.extui %9 : i1 to i32
    %c0_i32_8 = arith.constant 0 : i32
    %11 = arith.cmpi ne, %10, %c0_i32_8 : i32
    scf.if %11 {
      %c0_9 = arith.constant 0 : index
      %c0_10 = arith.constant 0 : index
      %12 = vector.load %arg5[%c0_9, %c0_10] : memref<64x1152xf32, #tpu.memory_space<vmem>>, vector<64x1152xf32>
      %c0_11 = arith.constant 0 : index
      %c0_12 = arith.constant 0 : index
      %13 = vector.load %arg4[%c0_11, %c0_12] : memref<1x1152xf32, #tpu.memory_space<vmem>>, vector<1x1152xf32>
      %14 = vector.broadcast %13 : vector<1x1152xf32> to vector<64x1152xf32>
      %15 = arith.addf %12, %14 : vector<64x1152xf32>
      %c0_13 = arith.constant 0 : index
      %c0_14 = arith.constant 0 : index
      %16 = vector.load %arg5[%c0_13, %c0_14] : memref<64x1152xf32, #tpu.memory_space<vmem>>, vector<64x1152xf32>
      tpu.vector_store %arg5[%c0_13, %c0_14], %15 {strides = array<i32>} : memref<64x1152xf32, #tpu.memory_space<vmem>>, vector<64x1152xf32>,
    } else {
    }
    return
  }
  func.func @transform_0(%arg0: i32, %arg1: i32) -> (i32, i32) {
    %c0_i32 = arith.constant 0 : i32
    %c0_i32_0 = arith.constant 0 : i32
    return %c0_i32, %arg1 : i32, i32
  }
  func.func @transform_1(%arg0: i32, %arg1: i32) -> (i32, i32) {
    %c0_i32 = arith.constant 0 : i32
    return %arg1, %arg0 : i32, i32
  }
  func.func @transform_2(%arg0: i32, %arg1: i32) -> (i32, i32) {
    %c0_i32 = arith.constant 0 : i32
    %c0_i32_0 = arith.constant 0 : i32
    return %c0_i32, %arg0 : i32, i32
  }
  func.func @transform_3(%arg0: i32, %arg1: i32) -> (i32, i32) {
    %c0_i32 = arith.constant 0 : i32
    %c0_i32_0 = arith.constant 0 : i32
    return %c0_i32, %arg0 : i32, i32
  }
}

</mosaic_0001>

<bundles_post_ra>
// kernel: tpu_custom_call.1
= control target key start
LH: loop header
LB: loop body
LE: loop exit
PB: predicated region body
PF: predicated region fallthrough
CT: control target
= control target key end

     0   :  { %s5426_s0 = inlined_call_operand.hbm [shape: bf16[64,768], index: 0, kind: input, shape index: {}]   ;;  %s5427_s1 = inlined_call_operand.hbm [shape: bf16[768,2304], index: 1, kind: input, shape index: {}]   ;;  %s5428_s2 = inlined_call_operand.hbm [shape: f32[1,2304], index: 2, kind: input, shape index: {}]   ;;  %s5429_s3 = inlined_call_operand.hbm [shape: f32[64,2304], index: 3, kind: output, shape index: {}]  }
   0x1   :  { %5438 = sst [smem:[#allocation20_spill]] %s5426_s0 }
   0x2   :  { %5439 = sst [smem:[#allocation21_spill]] %s5427_s1 }
   0x3   :  { %5440 = sst [smem:[#allocation22_spill]] %s5428_s2 }
   0x4   :  { %5441 = sst [smem:[#allocation23_spill]] %s5429_s3 }
   0x5   :  { %8 = vsyncpa [#allocation3], 0 }
   0x6   :  { %10 = vsyncpa [#allocation3 + $0x1], 0 }
   0x7   :  { %11 = vsyncpa [#allocation6], 0 }
   0x8   :  { %13 = vsyncpa [#allocation6 + $0x1], 0 }
   0x9   :  { %14 = vsyncpa [#allocation4], 0 }
   0xa   :  { %16 = vsyncpa [#allocation4 + $0x1], 0  ;;  %s4215_s12 = smov 0   ;;  %s4217_s13 = smov 0  }
   0xb   :  { %s4219_s14 = smov 0   ;;  %s4221_s15 = smov 0  }
   0xc   :  { %s4223_s16 = smov 0   ;;  %s4225_s17 = smov 0  }
   0xd   :  { %s4227_s18 = smov 0   ;;  %s4229_s19 = smov 0  }
   0xe   :  { %s4231_s20 = smov 0   ;;  %s4233_s21 = smov 0  }
   0xf   :  { %s4235_s22 = smov 0   ;;  %s4237_s23 = smov 0  }
  0x10   :  { %s4239_s24 = smov 0   ;;  %s4241_s25 = smov 0  }
  0x11 LB: > { %5442 = sst [smem:[#allocation13_spill]] %s4146_s17  ;;  %s31_s26 = sadd.s32 1, %s4170_s23  ;;  %s4178_s25 = sphi %s4241_s25, %s22_s25   ;;  %s4174_s24 = sphi %s4239_s24, %s5488_s24   ;;  %s4170_s23 = sphi %s4237_s23, %s5476_s23   ;;  %s4166_s22 = sphi %s4235_s22, %s5475_s22   ;;  %s4162_s21 = sphi %s4233_s21, %s5474_s21   ;;  %s4158_s20 = sphi %s4231_s20, %s5487_s20   ;;  %s4154_s19 = sphi %s4229_s19, %s5486_s19   ;;  %s4150_s18 = sphi %s4227_s18, %s5485_s18   ;;  %s4146_s17 = sphi %s4225_s17, %s5484_s17   ;;  %s4142_s16 = sphi %s4223_s16, %s5483_s16   ;;  %s4138_s15 = sphi %s4221_s15, %s5482_s15   ;;  %s4134_s14 = sphi %s4219_s14, %s5481_s14   ;;  %s4130_s13 = sphi %s4217_s13, %s5480_s13   ;;  %s4126_s12 = sphi %s4215_s12, %s5479_s12  }
  0x12   : > { %5443 = sst [smem:[#allocation14_spill]] %s4162_s21  ;;  %p49_p0 = scmp.eq.s32.totalorder %s4178_s25, 0 }
  0x13   : > { %5444 = sst [smem:[#allocation15_spill]] %s4166_s22  ;;  %p4287_p1 = scmp.ge.s32.totalorder %s31_s26, 2 }
  0x14   : > { %5445 = sst [smem:[#allocation16_spill]] %s4170_s23  ;;  %p76_p2 = scmp.ne.s32.totalorder %s4146_s17, %s4142_s16 }
  0x15   : > { %5446 = sst [smem:[#allocation17_spill]] %s4174_s24  ;;  %p82_p3 = scmp.ne.s32.totalorder %s4142_s16, %s4138_s15 }
  0x16   : > { %s5490_s26 = smov (%p4287_p1, %s31_s26), 0  ;;  %p78_p4 = por %p76_p2, %p49_p0 }
  0x17   : > { %5448 = sst [smem:[#allocation18_spill]] %s5490_s26  ;;  %p5434_p5 = scmp.lt.s32.totalorder %s4178_s25, 4 }
  0x18   : > { %s179_s29 = sand.u32 1, %s4178_s25   ;;  %s181_s30 = sand.u32 1, %s4146_s17  }
  0x19   : > { %s3452_s4 = smul.u32 1728, %s181_s30  ;;  %p4307_p6 = pnand %p5434_p5, %p78_p4 }
  0x1a   : > { %s185_s6 = smul.u32 9, %s4174_s24  ;;  %s5450_s1 = sld [smem:[#allocation21_spill]] }
  0x1b   : > { %s3482_s7 = smul.u32 864, %s4170_s23  ;;  %s183_s8 = scalar_lea.vmem [#allocation5], %s3452_s4 }
  0x1c   : > { %s193_s9 = sshll.u32 %s183_s8, 4  ;;  %p3137_p7 = scmp.ge.s32.totalorder %s4178_s25, 1  ;;  %s194_s9 = int_to_ptr.vmem [resolvable:$true] %s193_s9 }
  0x1d   : > { %s190_s10 = sadd.s32 %s3482_s7, %s185_s6  ;;  %s4317_s21 = scalar_lea.sflag [#allocation6], %s179_s29 }
  0x1e   : > { %s3135_s11 = sshll.u32 %s190_s10, 6  ;;  %p3944_p8 = pneg %p4307_p6 }
  0x1f   : > { %s3955_s30 = scalar_lea.vmem %s194_s9, 27648  ;;  %s4180_s2 = smov [#allocation5]  }
  0x20   : > { %s192_s22 = scalar_lea.hbm %s5450_s1, %s3135_s11  ;;  %p3956_p9 = scmp.ne.s32.totalorder %s194_s9, %s3955_s30 }
  0x21   : > { %s3960_s17 = sshll.u32 %s4180_s2, 4  ;;  %s3961_s17 = int_to_ptr.vmem [resolvable:$false] %s3960_s17 }
  0x22   : > { %p3958_p10 = pnand %p3956_p9, %p3944_p8  ;;  %s3962_s4 = scalar_lea.vmem %s3961_s17, 55296 }
  0x23   : > { %p3963_p12 = scmp.lt.s32.totalorder %s194_s9, %s3961_s17  ;;  %p3964_p13 = scmp.lt.s32.totalorder %s3962_s4, %s3955_s30 }
  0x24   : > { %p3959_p11 = pneg %p3958_p10 }
  0x25   : > { %p3965_p2 = por %p3964_p13, %p3963_p12 }
  0x27   : > { %p3966_p4 = pnand %p3965_p2, %p3959_p11 }
  0x29   : > { %3969 = shalt.err (!%p3966_p4)
}
  0x2a   : > { %s4181_s3 = smov 1152   ;;  %s4182_s2 = smov 576  }
  0x2b   : > { %s4183_s17 = smov 36   ;;  %p220_p8 = scmp.lt.s32.totalorder %s4178_s25, 5 }
  0x2c   : > { %3473 = dma.hbm_to_vmem [thread:$0]  (!%p4307_p6), %s192_s22, 27648, %s194_s9, %s4317_s21, %s4181_s3, %s4182_s2, %s4183_s17  }
  0x2d   : > { %p4327_p9 = pnand %p3137_p7, %p220_p8  ;;  %s4333_s29 = ssub.s32 %s4170_s23, %s5490_s26 }
  0x2e   : > { %s41_s6 = sadd.s32 1, %s4158_s20  ;;  %p39_p10 = scmp.eq.s32.totalorder %s4333_s29, 0 }
  0x2f   : > { %p48_p11 = scmp.ne.s32.totalorder %s4158_s20, %s4154_s19  ;;  %p54_p12 = scmp.ne.s32.totalorder %s4154_s19, %s4150_s18 }
  0x30   : > { %s158_s7 = sand.u32 1, %s4158_s20   ;;  %s3372_s22 = smul.u32 192, %s4170_s23 }
  0x31   : > { %s4343_s8 = scalar_select %p39_p10, %s4158_s20, %s41_s6  }
  0x32   : > { %p50_p13 = por %p49_p0, %p48_p11  ;;  %s3451_s5 = smul.u32 96, %s158_s7 }
  0x33   : > { %s5453_s0 = sld [smem:[#allocation20_spill]]  ;;  %s159_s2 = scalar_lea.sflag [#allocation3], %s158_s7 }
  0x34   : > { %p4350_p6 = pnand %p5434_p5, %p50_p13  ;;  %s162_s4 = scalar_lea.vmem [#allocation2], %s3451_s5 }
  0x35   : > { %s169_s3 = sshll.u32 %s162_s4, 4  ;;  %s4184_s6 = smov [#allocation2]   ;;  %s170_s3 = int_to_ptr.vmem [resolvable:$true] %s169_s3 }
  0x36   : > { %p3972_p7 = pneg %p4350_p6  ;;  %s3983_s17 = scalar_lea.vmem %s170_s3, 1536 }
  0x37   : > { %p3984_p2 = scmp.ne.s32.totalorder %s170_s3, %s3983_s17  ;;  %s3988_s1 = sshll.u32 %s4184_s6, 4  ;;  %s3989_s1 = int_to_ptr.vmem [resolvable:$false] %s3988_s1 }
  0x38   : > { %s3990_s26 = scalar_lea.vmem %s3989_s1, 3072  ;;  %p3991_p10 = scmp.lt.s32.totalorder %s170_s3, %s3989_s1 }
  0x39   : > { %s168_s30 = scalar_lea.hbm %s5453_s0, %s3372_s22  ;;  %p3986_p4 = pnand %p3984_p2, %p3972_p7 }
  0x3a   : > { %p3992_p11 = scmp.lt.s32.totalorder %s3990_s26, %s3983_s17 }
  0x3b   : > { %p3987_p8 = pneg %p3986_p4 }
  0x3c   : > { %p3993_p13 = por %p3992_p11, %p3991_p10 }
  0x3e   : > { %p3994_p5 = pnand %p3993_p13, %p3987_p8 }
  0x40   : > { %3997 = shalt.err (!%p3994_p5)
}
  0x41   : > { %s4185_s22 = smov 384   ;;  %s4186_s1 = smov 192  }
  0x42   : > { %s4187_s26 = smov 12   ;;  %s4362_s7 = sadd.s32 4294967295, %s4178_s25  }
  0x43   : > { %3470 = dma.hbm_to_vmem [thread:$0]  (!%p4350_p6), %s168_s30, 1536, %s170_s3, %s159_s2, %s4185_s22, %s4186_s1, %s4187_s26  }
  0x44   : > { %s3131_s5 = sadd.s32 4294967294, %s4178_s25   ;;  %s34_s10 = sadd.s32 1, %s4174_s24 }
  0x45   : > { %s5492_s10 = smov (!%p4287_p1, %s34_s10), %s4174_s24  ;;  %p55_p5 = scmp.eq.s32.totalorder %s4362_s7, 0 }
  0x46   : > { %s5454_s11 = sld [smem:[#allocation13_spill]]  ;;  %s95_s9 = sadd.s32 1, %s4134_s14 }
  0x47   : > { %p36_p6 = scmp.ge.s32.totalorder %s5492_s10, 2  ;;  %p102_p7 = scmp.ne.s32.totalorder %s4134_s14, %s4130_s13 }
  0x48   : > { %p4378_p2 = por %p55_p5, %p54_p12  ;;  %p4387_p1 = por %p82_p3, %p55_p5 }
  0x49   : > { %s5494_s10 = smov (%p36_p6, %s5492_s10), 0  ;;  %p4398_p4 = por %p102_p7, %p49_p0 }
  0x4a   : > { %5457 = sst [smem:[#allocation19_spill]] %s5494_s10  ;;  %p108_p12 = scmp.ne.s32.totalorder %s4130_s13, %s4126_s12 }
  0x4b   : > { %s65_s15 = ssub.s32 %s4174_s24, %s5494_s10  ;;  %p132_p8 = scmp.eq.s32.totalorder %s4362_s7, 3 }
  0x4c   : > { %s66_s4 = sor.u32 %s65_s15, %s4333_s29  ;;  %p93_p3 = scmp.eq.s32.totalorder %s65_s15, 0 }
  0x4d   : > { %p67_p10 = scmp.eq.s32.totalorder %s66_s4, 0  ;;  %p4413_p11 = por %p108_p12, %p55_p5 }
  0x4e   : > { %s4418_s2 = scalar_select %p93_p3, %s4134_s14, %s95_s9  }
  0x4f   : > { %s5460_s17 = sadd.s32 1, %s5454_s11  ;;  %p4428_p0 = por %p132_p8, %p102_p7 }
  0x50   : > { %s5496_s11 = smov (!%p67_p10, %s5454_s11), %s5460_s17  ;;  %p138_p13 = scmp.eq.s32.totalorder %s3131_s5, 3 }
  0x51   : > { %s205_s29 = sand.u32 1, %s4134_s14   ;;  %s3373_s22 = smul.u32 144, %s4174_s24 }
  0x52   : > { %p4437_p6 = por %p138_p13, %p108_p12  ;;  %s3454_s26 = smul.u32 9, %s205_s29 }
  0x53   : > { %p5463_p5 = scmp.lt.s32.totalorder %s4178_s25, 4  ;;  %s5465_s17 = sld [smem:[#allocation22_spill]] }
  0x54   : > { %s5462_s1 = scalar_select %p4437_p6, 1, 0 }
  0x55   : > { %p4445_p3 = pnand %p5463_p5, %p4398_p4  ;;  %s207_s5 = scalar_lea.vmem [#allocation7], %s3454_s26 }
  0x56   : > { %s215_s10 = sshll.u32 %s207_s5, 4  ;;  %s4188_s18 = smov [#allocation7]   ;;  %s216_s10 = int_to_ptr.vmem [resolvable:$true] %s215_s10 }
  0x57   : > { %p4000_p7 = pneg %p4445_p3  ;;  %s4011_s24 = scalar_lea.vmem %s216_s10, 144 }
  0x58   : > { %p4012_p12 = scmp.ne.s32.totalorder %s216_s10, %s4011_s24  ;;  %s4016_s29 = sshll.u32 %s4188_s18, 4  ;;  %s4017_s29 = int_to_ptr.vmem [resolvable:$false] %s4016_s29 }
  0x59   : > { %s213_s0 = scalar_lea.hbm %s5465_s17, %s3373_s22  ;;  %s4018_s23 = scalar_lea.vmem %s4017_s29, 288 }
  0x5a   : > { %p4014_p8 = pnand %p4012_p12, %p4000_p7  ;;  %p4019_p4 = scmp.lt.s32.totalorder %s216_s10, %s4017_s29 }
  0x5b   : > { %p4020_p13 = scmp.lt.s32.totalorder %s4018_s23, %s4011_s24 }
  0x5c   : > { %p4015_p10 = pneg %p4014_p8 }
  0x5d   : > { %p4021_p5 = por %p4020_p13, %p4019_p4 }
  0x5f   : > { %p4022_p6 = pnand %p4021_p5, %p4015_p10 }
  0x61   : > { %4025 = shalt.err (!%p4022_p6)
}
  0x62   : > { %3476 = dma.hbm_to_vmem [thread:$0]  (!%p4445_p3), %s213_s0, 144, %s216_s10, %s4317_s21  }
  0x63   : > { %224 = sbr.rel (%p4327_p9) target bundleno = 693 (0x2b5), region = 32  ;;  %s226_s22 = sand.u32 (!%p4327_p9), 1, %s4154_s19  }
  0x64   : > { %s3455_s26 = smul.u32 (!%p4327_p9), 96, %s226_s22  ;;  %s227_s15 = scalar_lea.sflag (!%p4327_p9), [#allocation3], %s226_s22 }
  0x66   : > { %s4460_s4 = scalar_lea.vmem (!%p4327_p9), [#allocation2], %s3455_s26 }
  0x68   : > { %4109 = dma.done.wait (%p4378_p2), %s227_s15, 1536  }
  0x69   : > { %4111 = vsyncadd (%p4378_p2), %s227_s15, 4294965760  ;;  %s235_s23 = sand.u32 1, %s4362_s7   ;;  %s237_s0 = sand.u32 1, %s4142_s16  }
  0x6a   : > { %s3456_s21 = smul.u32 1728, %s237_s0  ;;  %s236_s24 = scalar_lea.sflag [#allocation6], %s235_s23 }
  0x6c   : > { %s4468_s28 = scalar_lea.vmem [#allocation5], %s3456_s21 }
  0x6d   : > { %4113 = dma.done.wait (%p4387_p1), %s236_s24, 27648  }
  0x6e   : > { %4115 = vsyncadd (%p4387_p1), %s236_s24, 4294939648  ;;  %s4475_s10 = sand.u32 1, %s4130_s13  }
  0x6f   : > { %s3457_s30 = smul.u32 9, %s4475_s10 }
  0x71   : > { %s4478_s9 = scalar_lea.vmem [#allocation7], %s3457_s30 }
  0x72   : > { %4117 = dma.done.wait (%p4413_p11), %s236_s24, 144  }
  0x73   : > { %4119 = vsyncadd (%p4413_p11), %s236_s24, 4294967152  ;;  %s3458_s7 = smul.u32 576, %s4475_s10  ;;  %s5466_s5 = sld [smem:[#allocation14_spill]] }
  0x75   : > { %s4485_s17 = scalar_lea.vmem [#allocation8], %s3458_s7 }
  0x79   : > { %p3138_p9 = scmp.ne.s32.totalorder %s5466_s5, 0 }
  0x7b   : > { %290 = sbr.rel (%p3138_p9) target bundleno = 165 (0xa5), region = 48 }
  0x80   : > { %v4189_v0 = vmov 0.0  }
  0x81   : > { %291 = vst [vmem:[%s4485_s17] sm:$0xff] %v4189_v0  ;;  %292 = vst [vmem:[%s4485_s17 + $0x8] sm:$0xff] %v4189_v0 }
  0x82   : > { %293 = vst [vmem:[%s4485_s17 + $0x10] sm:$0xff] %v4189_v0  ;;  %294 = vst [vmem:[%s4485_s17 + $0x18] sm:$0xff] %v4189_v0 }
  0x83   : > { %295 = vst [vmem:[%s4485_s17 + $0x20] sm:$0xff] %v4189_v0  ;;  %296 = vst [vmem:[%s4485_s17 + $0x28] sm:$0xff] %v4189_v0 }
  0x84   : > { %297 = vst [vmem:[%s4485_s17 + $0x30] sm:$0xff] %v4189_v0  ;;  %298 = vst [vmem:[%s4485_s17 + $0x38] sm:$0xff] %v4189_v0 }
  0x85   : > { %299 = vst [vmem:[%s4485_s17 + $0x40] sm:$0xff] %v4189_v0  ;;  %300 = vst [vmem:[%s4485_s17 + $0x48] sm:$0xff] %v4189_v0 }
  0x86   : > { %301 = vst [vmem:[%s4485_s17 + $0x50] sm:$0xff] %v4189_v0  ;;  %302 = vst [vmem:[%s4485_s17 + $0x58] sm:$0xff] %v4189_v0 }
  0x87   : > { %303 = vst [vmem:[%s4485_s17 + $0x60] sm:$0xff] %v4189_v0  ;;  %304 = vst [vmem:[%s4485_s17 + $0x68] sm:$0xff] %v4189_v0 }
  0x88   : > { %305 = vst [vmem:[%s4485_s17 + $0x70] sm:$0xff] %v4189_v0  ;;  %306 = vst [vmem:[%s4485_s17 + $0x78] sm:$0xff] %v4189_v0 }
  0x89   : > { %307 = vst [vmem:[%s4485_s17 + $0x80] sm:$0xff] %v4189_v0  ;;  %308 = vst [vmem:[%s4485_s17 + $0x88] sm:$0xff] %v4189_v0 }
  0x8a   : > { %309 = vst [vmem:[%s4485_s17 + $0x90] sm:$0xff] %v4189_v0  ;;  %310 = vst [vmem:[%s4485_s17 + $0x98] sm:$0xff] %v4189_v0 }
  0x8b   : > { %311 = vst [vmem:[%s4485_s17 + $0xa0] sm:$0xff] %v4189_v0  ;;  %312 = vst [vmem:[%s4485_s17 + $0xa8] sm:$0xff] %v4189_v0 }
  0x8c   : > { %313 = vst [vmem:[%s4485_s17 + $0xb0] sm:$0xff] %v4189_v0  ;;  %314 = vst [vmem:[%s4485_s17 + $0xb8] sm:$0xff] %v4189_v0 }
  0x8d   : > { %315 = vst [vmem:[%s4485_s17 + $0xc0] sm:$0xff] %v4189_v0  ;;  %316 = vst [vmem:[%s4485_s17 + $0xc8] sm:$0xff] %v4189_v0 }
  0x8e   : > { %317 = vst [vmem:[%s4485_s17 + $0xd0] sm:$0xff] %v4189_v0  ;;  %318 = vst [vmem:[%s4485_s17 + $0xd8] sm:$0xff] %v4189_v0 }
  0x8f   : > { %319 = vst [vmem:[%s4485_s17 + $0xe0] sm:$0xff] %v4189_v0  ;;  %320 = vst [vmem:[%s4485_s17 + $0xe8] sm:$0xff] %v4189_v0 }
  0x90   : > { %321 = vst [vmem:[%s4485_s17 + $0xf0] sm:$0xff] %v4189_v0  ;;  %322 = vst [vmem:[%s4485_s17 + $0xf8] sm:$0xff] %v4189_v0 }
  0x91   : > { %323 = vst [vmem:[%s4485_s17 + $0x100] sm:$0xff] %v4189_v0  ;;  %324 = vst [vmem:[%s4485_s17 + $0x108] sm:$0xff] %v4189_v0 }
  0x92   : > { %325 = vst [vmem:[%s4485_s17 + $0x110] sm:$0xff] %v4189_v0  ;;  %326 = vst [vmem:[%s4485_s17 + $0x118] sm:$0xff] %v4189_v0 }
  0x93   : > { %327 = vst [vmem:[%s4485_s17 + $0x120] sm:$0xff] %v4189_v0  ;;  %328 = vst [vmem:[%s4485_s17 + $0x128] sm:$0xff] %v4189_v0 }
  0x94   : > { %329 = vst [vmem:[%s4485_s17 + $0x130] sm:$0xff] %v4189_v0  ;;  %330 = vst [vmem:[%s4485_s17 + $0x138] sm:$0xff] %v4189_v0 }
  0x95   : > { %331 = vst [vmem:[%s4485_s17 + $0x140] sm:$0xff] %v4189_v0  ;;  %332 = vst [vmem:[%s4485_s17 + $0x148] sm:$0xff] %v4189_v0 }
  0x96   : > { %333 = vst [vmem:[%s4485_s17 + $0x150] sm:$0xff] %v4189_v0  ;;  %334 = vst [vmem:[%s4485_s17 + $0x158] sm:$0xff] %v4189_v0 }
  0x97   : > { %335 = vst [vmem:[%s4485_s17 + $0x160] sm:$0xff] %v4189_v0  ;;  %336 = vst [vmem:[%s4485_s17 + $0x168] sm:$0xff] %v4189_v0 }
  0x98   : > { %337 = vst [vmem:[%s4485_s17 + $0x170] sm:$0xff] %v4189_v0  ;;  %338 = vst [vmem:[%s4485_s17 + $0x178] sm:$0xff] %v4189_v0 }
  0x99   : > { %339 = vst [vmem:[%s4485_s17 + $0x180] sm:$0xff] %v4189_v0  ;;  %340 = vst [vmem:[%s4485_s17 + $0x188] sm:$0xff] %v4189_v0 }
  0x9a   : > { %341 = vst [vmem:[%s4485_s17 + $0x190] sm:$0xff] %v4189_v0  ;;  %342 = vst [vmem:[%s4485_s17 + $0x198] sm:$0xff] %v4189_v0 }
  0x9b   : > { %343 = vst [vmem:[%s4485_s17 + $0x1a0] sm:$0xff] %v4189_v0  ;;  %344 = vst [vmem:[%s4485_s17 + $0x1a8] sm:$0xff] %v4189_v0 }
  0x9c   : > { %345 = vst [vmem:[%s4485_s17 + $0x1b0] sm:$0xff] %v4189_v0  ;;  %346 = vst [vmem:[%s4485_s17 + $0x1b8] sm:$0xff] %v4189_v0 }
  0x9d   : > { %347 = vst [vmem:[%s4485_s17 + $0x1c0] sm:$0xff] %v4189_v0  ;;  %348 = vst [vmem:[%s4485_s17 + $0x1c8] sm:$0xff] %v4189_v0 }
  0x9e   : > { %349 = vst [vmem:[%s4485_s17 + $0x1d0] sm:$0xff] %v4189_v0  ;;  %350 = vst [vmem:[%s4485_s17 + $0x1d8] sm:$0xff] %v4189_v0 }
  0x9f   : > { %351 = vst [vmem:[%s4485_s17 + $0x1e0] sm:$0xff] %v4189_v0  ;;  %352 = vst [vmem:[%s4485_s17 + $0x1e8] sm:$0xff] %v4189_v0 }
  0xa0   : > { %353 = vst [vmem:[%s4485_s17 + $0x1f0] sm:$0xff] %v4189_v0  ;;  %354 = vst [vmem:[%s4485_s17 + $0x1f8] sm:$0xff] %v4189_v0 }
  0xa1   : > { %355 = vst [vmem:[%s4485_s17 + $0x200] sm:$0xff] %v4189_v0  ;;  %356 = vst [vmem:[%s4485_s17 + $0x208] sm:$0xff] %v4189_v0 }
  0xa2   : > { %357 = vst [vmem:[%s4485_s17 + $0x210] sm:$0xff] %v4189_v0  ;;  %358 = vst [vmem:[%s4485_s17 + $0x218] sm:$0xff] %v4189_v0 }
  0xa3   : > { %359 = vst [vmem:[%s4485_s17 + $0x220] sm:$0xff] %v4189_v0  ;;  %360 = vst [vmem:[%s4485_s17 + $0x228] sm:$0xff] %v4189_v0 }
  0xa4   : > { %361 = vst [vmem:[%s4485_s17 + $0x230] sm:$0xff] %v4189_v0  ;;  %362 = vst [vmem:[%s4485_s17 + $0x238] sm:$0xff] %v4189_v0 }
  0xa5 PF: > { %v3607_v1 = vld [vmem:[%s4468_s28 + $0x1fc] ss:$36 sps:$4 sm:$0xff]   ;;  %v4190_v3 = vmov 0   ;;  %v3613_v6 = vld [vmem:[%s4468_s28 + $0x1b4] ss:$36 sps:$4 sm:$0xff]   ;;  %s5467_s27 = sld [smem:[#allocation14_spill]] }
  0xa6   : > { %v3609_v2 = vld [vmem:[%s4468_s28 + $0x67c] ss:$36 sps:$4 sm:$0xff]   ;;  %1964 = vmatprep.mubr.bf16.mxu1 %v4190_v3  ;;  %1859 = vmatprep.subr.bf16.mxu0 %v3607_v1  ;;  %v3615_v7 = vld [vmem:[%s4468_s28 + $0x634] ss:$36 sps:$4 sm:$0xff]   ;;  %v3619_v10 = vld [vmem:[%s4468_s28 + $0x16c] ss:$36 sps:$4 sm:$0xff]  }
  0xa7   : > { %v3611_v4 = vld [vmem:[%s4468_s28 + $0x1f8] ss:$36 sps:$4 sm:$0xff]   ;;  %1932 = vmatprep.subr.bf16.mxu1 %v3609_v2  ;;  %v3617_v8 = vld [vmem:[%s4468_s28 + $0x1b0] ss:$36 sps:$4 sm:$0xff]   ;;  %v3623_v12 = vld [vmem:[%s4468_s28 + $0x168] ss:$36 sps:$4 sm:$0xff]  }
  0xa8   : > { %v3612_v5 = vld [vmem:[%s4468_s28 + $0x678] ss:$36 sps:$4 sm:$0xff]   ;;  %1860 = vmatpush1.bf16.msra.mxu0 %v3611_v4  ;;  %v3618_v9 = vld [vmem:[%s4468_s28 + $0x630] ss:$36 sps:$4 sm:$0xff]   ;;  %v3624_v13 = vld [vmem:[%s4468_s28 + $0x5e8] ss:$36 sps:$4 sm:$0xff]  }
  0xa9   : > { %1933 = vmatpush1.bf16.msra.mxu1 %v3612_v5  ;;  %1861 = vmatprep.subr.bf16.mxu0 %v3613_v6  ;;  %v3621_v11 = vld [vmem:[%s4468_s28 + $0x5ec] ss:$36 sps:$4 sm:$0xff]   ;;  %v3625_v14 = vld [vmem:[%s4468_s28 + $0x124] ss:$36 sps:$4 sm:$0xff]   ;;  %v3631_v18 = vld [vmem:[%s4468_s28 + $0xdc] ss:$36 sps:$4 sm:$0xff]  }
  0xaa   : > { %1934 = vmatprep.subr.bf16.mxu1 %v3615_v7  ;;  %v3627_v15 = vld [vmem:[%s4468_s28 + $0x5a4] ss:$36 sps:$4 sm:$0xff]   ;;  %v3633_v19 = vld [vmem:[%s4468_s28 + $0x55c] ss:$36 sps:$4 sm:$0xff]   ;;  %v3637_v22 = vld [vmem:[%s4468_s28 + $0x94] ss:$36 sps:$4 sm:$0xff]  }
  0xab   : > { %v3629_v16 = vld [vmem:[%s4468_s28 + $0x120] ss:$36 sps:$4 sm:$0xff]   ;;  %v3635_v20 = vld [vmem:[%s4468_s28 + $0xd8] ss:$36 sps:$4 sm:$0xff]   ;;  %v3641_v24 = vld [vmem:[%s4468_s28 + $0x90] ss:$36 sps:$4 sm:$0xff]  }
  0xac   : > { %1862 = vmatpush1.bf16.msra.mxu0 %v3617_v8  ;;  %v3630_v17 = vld [vmem:[%s4468_s28 + $0x5a0] ss:$36 sps:$4 sm:$0xff]   ;;  %v3636_v21 = vld [vmem:[%s4468_s28 + $0x558] ss:$36 sps:$4 sm:$0xff]   ;;  %v3642_v25 = vld [vmem:[%s4468_s28 + $0x510] ss:$36 sps:$4 sm:$0xff]  }
  0xad   : > { %1935 = vmatpush1.bf16.msra.mxu1 %v3618_v9  ;;  %1863 = vmatprep.subr.bf16.mxu0 %v3619_v10  ;;  %v3639_v23 = vld [vmem:[%s4468_s28 + $0x514] ss:$36 sps:$4 sm:$0xff]   ;;  %v3643_v26 = vld [vmem:[%s4468_s28 + $0x4c] ss:$36 sps:$4 sm:$0xff]   ;;  %v3649_v30 = vld [vmem:[%s4468_s28 + $0x4] ss:$36 sps:$4 sm:$0xff]  }
  0xae   : > { %1936 = vmatprep.subr.bf16.mxu1 %v3621_v11  ;;  %v3645_v27 = vld [vmem:[%s4468_s28 + $0x4cc] ss:$36 sps:$4 sm:$0xff]   ;;  %v3651_v31 = vld [vmem:[%s4468_s28 + $0x484] ss:$36 sps:$4 sm:$0xff]   ;;  %v3655_v34 = vld [vmem:[%s4468_s28 + $0x43c] ss:$36 sps:$4 sm:$0xff]  }
  0xaf   : > { %v3647_v28 = vld [vmem:[%s4468_s28 + $0x48] ss:$36 sps:$4 sm:$0xff]   ;;  %v3653_v32 = vld [vmem:[%s4468_s28] ss:$36 sps:$4 sm:$0xff]   ;;  %v3660_v38 = vld [vmem:[%s4468_s28 + $0x438] ss:$36 sps:$4 sm:$0xff]  }
  0xb0   : > { %1864 = vmatpush1.bf16.msra.mxu0 %v3623_v12  ;;  %v3648_v29 = vld [vmem:[%s4468_s28 + $0x4c8] ss:$36 sps:$4 sm:$0xff]   ;;  %v3654_v33 = vld [vmem:[%s4468_s28 + $0x480] ss:$36 sps:$4 sm:$0xff]   ;;  %v3662_v39 = vld [vmem:[%s4468_s28 + $0x3f4] ss:$36 sps:$4 sm:$0xff]  }
  0xb1   : > { %1937 = vmatpush1.bf16.msra.mxu1 %v3624_v13  ;;  %1865 = vmatprep.subr.bf16.mxu0 %v3625_v14  ;;  %v3659_v35 = vld [vmem:[%s4468_s28 + $0x204] ss:$36 sps:$4 sm:$0xff]   ;;  %v3666_v40 = vld [vmem:[%s4468_s28 + $0x1bc] ss:$36 sps:$4 sm:$0xff]   ;;  %v3667_v42 = vld [vmem:[%s4468_s28 + $0x3f0] ss:$36 sps:$4 sm:$0xff]  }
  0xb2   : > { %1938 = vmatprep.subr.bf16.mxu1 %v3627_v15  ;;  %v4668_v36 = vld [vmem:[%s4460_s4 + $0x8] ss:$12 sps:$4 sm:$0xff]   ;;  %v3657_v37 = vld [vmem:[%s4468_s28 + $0x200] ss:$36 sps:$4 sm:$0xff]   ;;  %v3664_v41 = vld [vmem:[%s4468_s28 + $0x1b8] ss:$36 sps:$4 sm:$0xff]  }
  0xb3   : > { %v3668_v43 = vld [vmem:[%s4468_s28 + $0x3ac] ss:$36 sps:$4 sm:$0xff]   ;;  %v3672_v44 = vld [vmem:[%s4468_s28 + $0x174] ss:$36 sps:$4 sm:$0xff]   ;;  %v3674_v47 = vld [vmem:[%s4468_s28 + $0x364] ss:$36 sps:$4 sm:$0xff]  }
  0xb4   : > { %1866 = vmatpush1.bf16.msra.mxu0 %v3629_v16  ;;  %v3670_v45 = vld [vmem:[%s4468_s28 + $0x170] ss:$36 sps:$4 sm:$0xff]   ;;  %v3673_v46 = vld [vmem:[%s4468_s28 + $0x3a8] ss:$36 sps:$4 sm:$0xff]   ;;  %v3679_v50 = vld [vmem:[%s4468_s28 + $0x360] ss:$36 sps:$4 sm:$0xff]  }
  0xb5   : > { %1939 = vmatpush1.bf16.msra.mxu1 %v3630_v17  ;;  %1867 = vmatprep.subr.bf16.mxu0 %v3631_v18  ;;  %v3678_v48 = vld [vmem:[%s4468_s28 + $0x12c] ss:$36 sps:$4 sm:$0xff]   ;;  %v3680_v51 = vld [vmem:[%s4468_s28 + $0x31c] ss:$36 sps:$4 sm:$0xff]   ;;  %v3684_v53 = vld [vmem:[%s4468_s28 + $0xe4] ss:$36 sps:$4 sm:$0xff]  }
  0xb6   : > { %1940 = vmatprep.subr.bf16.mxu1 %v3633_v19  ;;  %v3676_v49 = vld [vmem:[%s4468_s28 + $0x128] ss:$36 sps:$4 sm:$0xff]   ;;  %v4688_v52 = vld [vmem:[%s4460_s4 + $0x4] ss:$12 sps:$4 sm:$0xff]   ;;  %v3685_v55 = vld [vmem:[%s4468_s28 + $0x318] ss:$36 sps:$4 sm:$0xff]  }
  0xb7   : > { %1891 = vmatprep.mubr.bf16.mxu0 %v4688_v52  ;;  %v3682_v54 = vld [vmem:[%s4468_s28 + $0xe0] ss:$36 sps:$4 sm:$0xff]   ;;  %v3686_v56 = vld [vmem:[%s4468_s28 + $0x2d4] ss:$36 sps:$4 sm:$0xff]   ;;  %v3692_v61 = vld [vmem:[%s4468_s28 + $0x28c] ss:$36 sps:$4 sm:$0xff]  }
  0xb8   : > { %1868 = vmatpush1.bf16.msra.mxu0 %v3635_v20  ;;  %v3690_v57 = vld [vmem:[%s4468_s28 + $0x9c] ss:$36 sps:$4 sm:$0xff]   ;;  %v3691_v59 = vld [vmem:[%s4468_s28 + $0x2d0] ss:$36 sps:$4 sm:$0xff]   ;;  %v3697_v0 = vld [vmem:[%s4468_s28 + $0x288] ss:$36 sps:$4 sm:$0xff]  }
  0xb9   : > { %1941 = vmatpush1.bf16.msra.mxu1 %v3636_v21  ;;  %1869 = vmatprep.subr.bf16.mxu0 %v3637_v22  ;;  %v3688_v58 = vld [vmem:[%s4468_s28 + $0x98] ss:$36 sps:$4 sm:$0xff]   ;;  %v4699_v60 = vld [vmem:[%s4460_s4 + $0x20] ss:$12 sps:$4 sm:$0xff]   ;;  %v3694_v63 = vld [vmem:[%s4468_s28 + $0x50] ss:$36 sps:$4 sm:$0xff]  }
  0xba   : > { %1942 = vmatprep.subr.bf16.mxu1 %v3639_v23  ;;  %v3696_v62 = vld [vmem:[%s4468_s28 + $0x54] ss:$36 sps:$4 sm:$0xff]   ;;  %v3698_v1 = vld [vmem:[%s4468_s28 + $0x244] ss:$36 sps:$4 sm:$0xff]   ;;  %v3702_v2 = vld [vmem:[%s4468_s28 + $0xc] ss:$36 sps:$4 sm:$0xff]  }
  0xbb   : > { %v3700_v4 = vld [vmem:[%s4468_s28 + $0x8] ss:$36 sps:$4 sm:$0xff]   ;;  %v3703_v5 = vld [vmem:[%s4468_s28 + $0x240] ss:$36 sps:$4 sm:$0xff]   ;;  %v3713_v14 = vld [vmem:[%s4468_s28 + $0x3f8] ss:$36 sps:$4 sm:$0xff]  }
  0xbc   : > { %1870 = vmatpush1.bf16.msra.mxu0 %v3641_v24  ;;  %v4712_v6 = vld [vmem:[%s4460_s4 + $0x38] ss:$12 sps:$4 sm:$0xff]   ;;  %v4717_v9 = vld [vmem:[%s4460_s4] ss:$12 sps:$4 sm:$0xff]   ;;  %v4728_v16 = vld [vmem:[%s4460_s4 + $0x1c] ss:$12 sps:$4 sm:$0xff]  }
  0xbd   : > { %1943 = vmatpush1.bf16.msra.mxu1 %v3642_v25  ;;  %1871 = vmatprep.subr.bf16.mxu0 %v3643_v26  ;;  %v3709_v7 = vld [vmem:[%s4468_s28 + $0x444] ss:$36 sps:$4 sm:$0xff]   ;;  %v3715_v12 = vld [vmem:[%s4468_s28 + $0x3fc] ss:$36 sps:$4 sm:$0xff]   ;;  %v3725_v18 = vld [vmem:[%s4468_s28 + $0x3b4] ss:$36 sps:$4 sm:$0xff]  }
  0xbe   : > { %1944 = vmatprep.subr.bf16.mxu1 %v3645_v27  ;;  %v3712_v8 = vld [vmem:[%s4468_s28 + $0x684] ss:$36 sps:$4 sm:$0xff]   ;;  %v3718_v13 = vld [vmem:[%s4468_s28 + $0x63c] ss:$36 sps:$4 sm:$0xff]   ;;  %v3728_v19 = vld [vmem:[%s4468_s28 + $0x5f4] ss:$36 sps:$4 sm:$0xff]  }
  0xbf   : > { %v3707_v10 = vld [vmem:[%s4468_s28 + $0x440] ss:$36 sps:$4 sm:$0xff]   ;;  %v3716_v15 = vld [vmem:[%s4468_s28 + $0x638] ss:$36 sps:$4 sm:$0xff]   ;;  %v3723_v21 = vld [vmem:[%s4468_s28 + $0x3b0] ss:$36 sps:$4 sm:$0xff]  }
  0xc0   : > { %1872 = vmatpush1.bf16.msra.mxu0 %v3647_v28  ;;  %v3710_v11 = vld [vmem:[%s4468_s28 + $0x680] ss:$36 sps:$4 sm:$0xff]   ;;  %v4732_v17 = vld [vmem:[%s4460_s4 + $0x50] ss:$12 sps:$4 sm:$0xff]   ;;  %v3729_v26 = vld [vmem:[%s4468_s28 + $0x368] ss:$36 sps:$4 sm:$0xff]  }
  0xc1   : > { %1945 = vmatpush1.bf16.msra.mxu1 %v3648_v29  ;;  %1873 = vmatprep.subr.bf16.mxu0 %v3649_v30  ;;  %v4738_v20 = vld [vmem:[%s4460_s4 + $0x18] ss:$12 sps:$4 sm:$0xff]   ;;  %v3726_v22 = vld [vmem:[%s4468_s28 + $0x5f0] ss:$36 sps:$4 sm:$0xff]   ;;  %v3732_v27 = vld [vmem:[%s4468_s28 + $0x5a8] ss:$36 sps:$4 sm:$0xff]  }
  0xc2   : > { %1946 = vmatprep.subr.bf16.mxu1 %v3651_v31  ;;  %v3731_v23 = vld [vmem:[%s4468_s28 + $0x36c] ss:$36 sps:$4 sm:$0xff]   ;;  %v4747_v25 = vld [vmem:[%s4460_s4 + $0x34] ss:$12 sps:$4 sm:$0xff]   ;;  %v3741_v28 = vld [vmem:[%s4468_s28 + $0x324] ss:$36 sps:$4 sm:$0xff]  }
  0xc3   : > { %v3734_v24 = vld [vmem:[%s4468_s28 + $0x5ac] ss:$36 sps:$4 sm:$0xff]   ;;  %v3744_v29 = vld [vmem:[%s4468_s28 + $0x564] ss:$36 sps:$4 sm:$0xff]   ;;  %p3367_p2 = scmp.ne.s32.totalorder %s5467_s27, 1 }
  0xc4   : > { %1874 = vmatpush1.bf16.msra.mxu0 %v3653_v32  ;;  %v4756_v30 = vld [vmem:[%s4460_s4 + $0x30] ss:$12 sps:$4 sm:$0xff]   ;;  %v3739_v31 = vld [vmem:[%s4468_s28 + $0x320] ss:$36 sps:$4 sm:$0xff]  }
  0xc5   : > { %1947 = vmatpush1.bf16.msra.mxu1 %v3654_v33  ;;  %1875 = vmatprep.subr.bf16.mxu0 %v3655_v34  ;;  %v3742_v32 = vld [vmem:[%s4468_s28 + $0x560] ss:$36 sps:$4 sm:$0xff]  }
  0xc6   : > { %2005 = vmatprep.subr.bf16.mxu1 %v3659_v35  ;;  %v3747_v33 = vld [vmem:[%s4468_s28 + $0x2dc] ss:$36 sps:$4 sm:$0xff]   ;;  %v4763_v35 = vld [vmem:[%s4460_s4 + $0x4c] ss:$12 sps:$4 sm:$0xff]  }
  0xc7   : > { %v3750_v34 = vld [vmem:[%s4468_s28 + $0x51c] ss:$36 sps:$4 sm:$0xff]  }
  0xc8   : > { %1965 = vmatmul.mubr.bf16.vlgmr.msra.gmra.mxu1 %v4668_v36  ;;  %1876 = vmatpush2.bf16.msra.mxu0 %v3660_v38  ;;  %v3748_v38 = vld [vmem:[%s4468_s28 + $0x518] ss:$36 sps:$4 sm:$0xff]  }
  0xc9   : > { %2006 = vmatpush1.bf16.msra.mxu1 %v3657_v37  ;;  %1877 = vmatprep.subr.bf16.mxu0 %v3662_v39  ;;  %v3745_v37 = vld [vmem:[%s4468_s28 + $0x2d8] ss:$36 sps:$4 sm:$0xff]  }
  0xca   : > { %2007 = vmatprep.subr.bf16.mxu1 %v3666_v40  ;;  %1974 = vmatprep.mubr.bf16.mxu1 %v4190_v3  ;;  %v3757_v39 = vld [vmem:[%s4468_s28 + $0x294] ss:$36 sps:$4 sm:$0xff]  }
  0xcb   : > { %v3760_v40 = vld [vmem:[%s4468_s28 + $0x4d4] ss:$36 sps:$4 sm:$0xff]  }
  0xcc   : > { %1878 = vmatpush2.bf16.msra.mxu0 %v3667_v42  ;;  %v3755_v42 = vld [vmem:[%s4468_s28 + $0x290] ss:$36 sps:$4 sm:$0xff]  }
  0xcd   : > { %2008 = vmatpush1.bf16.msra.mxu1 %v3664_v41  ;;  %1879 = vmatprep.subr.bf16.mxu0 %v3668_v43  ;;  %v4772_v41 = vld [vmem:[%s4460_s4 + $0x48] ss:$12 sps:$4 sm:$0xff]  }
  0xce   : > { %2009 = vmatprep.subr.bf16.mxu1 %v3672_v44  ;;  %v3758_v43 = vld [vmem:[%s4468_s28 + $0x4d0] ss:$36 sps:$4 sm:$0xff]  }
  0xcf   : > { %v3763_v44 = vld [vmem:[%s4468_s28 + $0x24c] ss:$36 sps:$4 sm:$0xff]  }
  0xd0   : > { %1880 = vmatpush2.bf16.msra.mxu0 %v3673_v46  ;;  %1975 = vmatmul.mubr.bf16.gmra.mxu1 %v4699_v60  ;;  %v3761_v46 = vld [vmem:[%s4468_s28 + $0x248] ss:$36 sps:$4 sm:$0xff]  }
  0xd1   : > { %2010 = vmatpush1.bf16.msra.mxu1 %v3670_v45  ;;  %1881 = vmatprep.subr.bf16.mxu0 %v3674_v47  ;;  %v3766_v45 = vld [vmem:[%s4468_s28 + $0x48c] ss:$36 sps:$4 sm:$0xff]  }
  0xd2   : > { %2011 = vmatprep.subr.bf16.mxu1 %v3678_v48  ;;  %1984 = vmatprep.mubr.bf16.mxu1 %v4190_v3  ;;  %v3764_v47 = vld [vmem:[%s4468_s28 + $0x488] ss:$36 sps:$4 sm:$0xff]  }
  0xd3   : > { %v3769_v48 = vld [vmem:[%s4468_s28 + $0x20c] ss:$36 sps:$4 sm:$0xff]  }
  0xd4   : > { %1882 = vmatpush2.bf16.msra.mxu0 %v3679_v50  ;;  %v3767_v50 = vld [vmem:[%s4468_s28 + $0x208] ss:$36 sps:$4 sm:$0xff]  }
  0xd5   : > { %2012 = vmatpush1.bf16.msra.mxu1 %v3676_v49  ;;  %1883 = vmatprep.subr.bf16.mxu0 %v3680_v51  ;;  %v3772_v49 = vld [vmem:[%s4468_s28 + $0x68c] ss:$36 sps:$4 sm:$0xff]  }
  0xd6   : > { %2013 = vmatprep.subr.bf16.mxu1 %v3684_v53  ;;  %v3770_v51 = vld [vmem:[%s4468_s28 + $0x688] ss:$36 sps:$4 sm:$0xff]  }
  0xd7   : > { %v3775_v53 = vld [vmem:[%s4468_s28 + $0x1c4] ss:$36 sps:$4 sm:$0xff]  }
  0xd8   : > { %1884 = vmatpush2.bf16.msra.mxu0 %v3685_v55  ;;  %1985 = vmatmul.mubr.bf16.gmra.mxu1 %v4712_v6  ;;  %v3773_v55 = vld [vmem:[%s4468_s28 + $0x1c0] ss:$36 sps:$4 sm:$0xff]  }
  0xd9   : > { %2014 = vmatpush1.bf16.msra.mxu1 %v3682_v54  ;;  %1885 = vmatprep.subr.bf16.mxu0 %v3686_v56  ;;  %v3778_v54 = vld [vmem:[%s4468_s28 + $0x644] ss:$36 sps:$4 sm:$0xff]  }
  0xda   : > { %2015 = vmatprep.subr.bf16.mxu1 %v3690_v57  ;;  %1994 = vmatprep.mubr.bf16.mxu1 %v4190_v3  ;;  %v3776_v56 = vld [vmem:[%s4468_s28 + $0x640] ss:$36 sps:$4 sm:$0xff]  }
  0xdb   : > { %v3781_v57 = vld [vmem:[%s4468_s28 + $0x17c] ss:$36 sps:$4 sm:$0xff]  }
  0xdc   : > { %1886 = vmatpush2.bf16.msra.mxu0 %v3691_v59  ;;  %v3779_v59 = vld [vmem:[%s4468_s28 + $0x178] ss:$36 sps:$4 sm:$0xff]  }
  0xdd   : > { %2016 = vmatpush1.bf16.msra.mxu1 %v3688_v58  ;;  %1887 = vmatprep.subr.bf16.mxu0 %v3692_v61  ;;  %v3784_v58 = vld [vmem:[%s4468_s28 + $0x5fc] ss:$36 sps:$4 sm:$0xff]  }
  0xde   : > { %2017 = vmatprep.subr.bf16.mxu1 %v3696_v62  ;;  %v3782_v61 = vld [vmem:[%s4468_s28 + $0x5f8] ss:$36 sps:$4 sm:$0xff]  }
  0xdf   : > { %v3787_v62 = vld [vmem:[%s4468_s28 + $0x134] ss:$36 sps:$4 sm:$0xff]  }
  0xe0   : > { %1888 = vmatpush2.bf16.msra.mxu0 %v3697_v0  ;;  %1995 = vmatmul.mubr.bf16.gmra.mxu1 %v4732_v17  ;;  %v3785_v0 = vld [vmem:[%s4468_s28 + $0x130] ss:$36 sps:$4 sm:$0xff]  }
  0xe1   : > { %2018 = vmatpush1.bf16.msra.mxu1 %v3694_v63  ;;  %1889 = vmatprep.subr.bf16.mxu0 %v3698_v1  ;;  %v3790_v63 = vld [vmem:[%s4468_s28 + $0x5b4] ss:$36 sps:$4 sm:$0xff]  }
  0xe2   : > { %2019 = vmatprep.subr.bf16.mxu1 %v3702_v2  ;;  %2037 = vmatprep.mubr.bf16.mxu1 %v4688_v52  ;;  %v3788_v1 = vld [vmem:[%s4468_s28 + $0x5b0] ss:$36 sps:$4 sm:$0xff]  }
  0xe3   : > { %v3793_v2 = vld [vmem:[%s4468_s28 + $0xec] ss:$36 sps:$4 sm:$0xff]  }
  0xe4   : > { %1890 = vmatpush2.bf16.msra.mxu0 %v3703_v5  ;;  %v3791_v5 = vld [vmem:[%s4468_s28 + $0xe8] ss:$36 sps:$4 sm:$0xff]  }
  0xe5   : > { %2020 = vmatpush1.bf16.msra.mxu1 %v3700_v4  ;;  %2078 = vmatprep.subr.bf16.mxu0 %v3712_v8  ;;  %v3796_v4 = vld [vmem:[%s4468_s28 + $0x56c] ss:$36 sps:$4 sm:$0xff]   ;;  %v3799_v8 = vld [vmem:[%s4468_s28 + $0xa4] ss:$36 sps:$4 sm:$0xff]  }
  0xe6   : > { %2021 = vmatprep.subr.bf16.mxu1 %v3709_v7  ;;  %v3794_v7 = vld [vmem:[%s4468_s28 + $0x568] ss:$36 sps:$4 sm:$0xff]  }
  0xe7   : > { %1892 = vmatmul.mubr.bf16.vlgmr.msra.gmra.mxu0 %v4717_v9 }
  0xe8   : > { %2079 = vmatpush1.bf16.msra.mxu0 %v3710_v11  ;;  %1901 = vmatprep.mubr.bf16.mxu0 %v4728_v16  ;;  %v3797_v11 = vld [vmem:[%s4468_s28 + $0xa0] ss:$36 sps:$4 sm:$0xff]  }
  0xe9   : > { %2022 = vmatpush2.bf16.msra.mxu1 %v3707_v10  ;;  %2080 = vmatprep.subr.bf16.mxu0 %v3718_v13  ;;  %v3802_v10 = vld [vmem:[%s4468_s28 + $0x524] ss:$36 sps:$4 sm:$0xff]   ;;  %v3805_v13 = vld [vmem:[%s4468_s28 + $0x5c] ss:$36 sps:$4 sm:$0xff]  }
  0xea   : > { %2023 = vmatprep.subr.bf16.mxu1 %v3715_v12  ;;  %v3800_v12 = vld [vmem:[%s4468_s28 + $0x520] ss:$36 sps:$4 sm:$0xff]  }
  0xec   : > { %2081 = vmatpush1.bf16.msra.mxu0 %v3716_v15  ;;  %v3803_v15 = vld [vmem:[%s4468_s28 + $0x58] ss:$36 sps:$4 sm:$0xff]  }
  0xed   : > { %2024 = vmatpush2.bf16.msra.mxu1 %v3713_v14  ;;  %2082 = vmatprep.subr.bf16.mxu0 %v3728_v19  ;;  %v3808_v14 = vld [vmem:[%s4468_s28 + $0x4dc] ss:$36 sps:$4 sm:$0xff]   ;;  %v3811_v19 = vld [vmem:[%s4468_s28 + $0x14] ss:$36 sps:$4 sm:$0xff]  }
  0xee   : > { %2025 = vmatprep.subr.bf16.mxu1 %v3725_v18  ;;  %v3806_v18 = vld [vmem:[%s4468_s28 + $0x4d8] ss:$36 sps:$4 sm:$0xff]  }
  0xef   : > { %1902 = vmatmul.mubr.bf16.gmra.mxu0 %v4738_v20 }
  0xf0   : > { %2083 = vmatpush1.bf16.msra.mxu0 %v3726_v22  ;;  %1911 = vmatprep.mubr.bf16.mxu0 %v4747_v25  ;;  %v3809_v22 = vld [vmem:[%s4468_s28 + $0x10] ss:$36 sps:$4 sm:$0xff]  }
  0xf1   : > { %2026 = vmatpush2.bf16.msra.mxu1 %v3723_v21  ;;  %2084 = vmatprep.subr.bf16.mxu0 %v3734_v24  ;;  %v3814_v21 = vld [vmem:[%s4468_s28 + $0x494] ss:$36 sps:$4 sm:$0xff]   ;;  %v3817_v24 = vld [vmem:[%s4468_s28 + $0x44c] ss:$36 sps:$4 sm:$0xff]  }
  0xf2   : > { %2027 = vmatprep.subr.bf16.mxu1 %v3731_v23  ;;  %v3812_v23 = vld [vmem:[%s4468_s28 + $0x490] ss:$36 sps:$4 sm:$0xff]  }
  0xf4   : > { %2085 = vmatpush1.bf16.msra.mxu0 %v3732_v27  ;;  %v3815_v27 = vld [vmem:[%s4468_s28 + $0x448] ss:$36 sps:$4 sm:$0xff]  }
  0xf5   : > { %2028 = vmatpush2.bf16.msra.mxu1 %v3729_v26  ;;  %2086 = vmatprep.subr.bf16.mxu0 %v3744_v29  ;;  %v3820_v26 = vld [vmem:[%s4468_s28 + $0x214] ss:$36 sps:$4 sm:$0xff]   ;;  %v3823_v29 = vld [vmem:[%s4468_s28 + $0x404] ss:$36 sps:$4 sm:$0xff]  }
  0xf6   : > { %2029 = vmatprep.subr.bf16.mxu1 %v3741_v28  ;;  %v3818_v28 = vld [vmem:[%s4468_s28 + $0x210] ss:$36 sps:$4 sm:$0xff]  }
  0xf7   : > { %1912 = vmatmul.mubr.bf16.gmra.mxu0 %v4756_v30 }
  0xf8   : > { %2087 = vmatpush1.bf16.msra.mxu0 %v3742_v32  ;;  %1921 = vmatprep.mubr.bf16.mxu0 %v4763_v35  ;;  %v3821_v32 = vld [vmem:[%s4468_s28 + $0x400] ss:$36 sps:$4 sm:$0xff]  }
  0xf9   : > { %2030 = vmatpush2.bf16.msra.mxu1 %v3739_v31  ;;  %2088 = vmatprep.subr.bf16.mxu0 %v3750_v34  ;;  %v3826_v31 = vld [vmem:[%s4468_s28 + $0x1cc] ss:$36 sps:$4 sm:$0xff]   ;;  %v3829_v34 = vld [vmem:[%s4468_s28 + $0x3bc] ss:$36 sps:$4 sm:$0xff]  }
  0xfa   : > { %2031 = vmatprep.subr.bf16.mxu1 %v3747_v33  ;;  %v3824_v33 = vld [vmem:[%s4468_s28 + $0x1c8] ss:$36 sps:$4 sm:$0xff]  }
  0xfc   : > { %2089 = vmatpush1.bf16.msra.mxu0 %v3748_v38  ;;  %v3827_v38 = vld [vmem:[%s4468_s28 + $0x3b8] ss:$36 sps:$4 sm:$0xff]  }
  0xfd   : > { %2032 = vmatpush2.bf16.msra.mxu1 %v3745_v37  ;;  %2090 = vmatprep.subr.bf16.mxu0 %v3760_v40  ;;  %v3832_v37 = vld [vmem:[%s4468_s28 + $0x184] ss:$36 sps:$4 sm:$0xff]   ;;  %v3838_v40 = vld [vmem:[%s4468_s28 + $0x13c] ss:$36 sps:$4 sm:$0xff]  }
  0xfe   : > { %2033 = vmatprep.subr.bf16.mxu1 %v3757_v39  ;;  %v3830_v39 = vld [vmem:[%s4468_s28 + $0x180] ss:$36 sps:$4 sm:$0xff]  }
  0xff   : > { %1922 = vmatmul.mubr.bf16.gmra.mxu0 %v4772_v41 }
 0x100   : > { %2091 = vmatpush1.bf16.msra.mxu0 %v3758_v43  ;;  %2110 = vmatprep.mubr.bf16.mxu0 %v4190_v3  ;;  %v3836_v43 = vld [vmem:[%s4468_s28 + $0x138] ss:$36 sps:$4 sm:$0xff]  }
 0x101   : > { %2034 = vmatpush2.bf16.msra.mxu1 %v3755_v42  ;;  %2092 = vmatprep.subr.bf16.mxu0 %v3766_v45  ;;  %v3833_v42 = vld [vmem:[%s4468_s28 + $0x370] ss:$36 sps:$4 sm:$0xff]  }
 0x102   : > { %2035 = vmatprep.subr.bf16.mxu1 %v3763_v44  ;;  %v3841_v44 = vld [vmem:[%s4468_s28 + $0x32c] ss:$36 sps:$4 sm:$0xff]   ;;  %v3844_v45 = vld [vmem:[%s4468_s28 + $0xf4] ss:$36 sps:$4 sm:$0xff]  }
 0x104   : > { %2093 = vmatpush1.bf16.msra.mxu0 %v3764_v47  ;;  %v3842_v47 = vld [vmem:[%s4468_s28 + $0xf0] ss:$36 sps:$4 sm:$0xff]  }
 0x105   : > { %2036 = vmatpush2.bf16.msra.mxu1 %v3761_v46  ;;  %2151 = vmatprep.subr.bf16.mxu0 %v3769_v48  ;;  %v3839_v46 = vld [vmem:[%s4468_s28 + $0x328] ss:$36 sps:$4 sm:$0xff]  }
 0x106   : > { %2224 = vmatprep.subr.bf16.mxu1 %v3772_v49  ;;  %v3847_v48 = vld [vmem:[%s4468_s28 + $0x2e4] ss:$36 sps:$4 sm:$0xff]  }
 0x107   : > { %2111 = vmatmul.mubr.bf16.vlgmr.msra.gmra.mxu0 %v4668_v36  ;;  %v3845_v49 = vld [vmem:[%s4468_s28 + $0x2e0] ss:$36 sps:$4 sm:$0xff]  }
 0x108   : > { %2038 = vmatmul.mubr.bf16.vlgmr.msra.gmra.mxu1 %v4717_v9  ;;  %2152 = vmatpush1.bf16.msra.mxu0 %v3767_v50  ;;  %v3848_v50 = vld [vmem:[%s4468_s28 + $0xa8] ss:$36 sps:$4 sm:$0xff]  }
 0x109   : > { %2225 = vmatpush1.bf16.msra.mxu1 %v3770_v51  ;;  %2153 = vmatprep.subr.bf16.mxu0 %v3775_v53  ;;  %v3853_v51 = vld [vmem:[%s4468_s28 + $0x29c] ss:$36 sps:$4 sm:$0xff]   ;;  %v3856_v53 = vld [vmem:[%s4468_s28 + $0x64] ss:$36 sps:$4 sm:$0xff]  }
 0x10a   : > { %2226 = vmatprep.subr.bf16.mxu1 %v3778_v54  ;;  %2047 = vmatprep.mubr.bf16.mxu1 %v4728_v16  ;;  %v3851_v54 = vld [vmem:[%s4468_s28 + $0x298] ss:$36 sps:$4 sm:$0xff]  }
 0x10b   : > { %2120 = vmatprep.mubr.bf16.mxu0 %v4190_v3 }
 0x10c   : > { %2154 = vmatpush1.bf16.msra.mxu0 %v3773_v55  ;;  %v3854_v55 = vld [vmem:[%s4468_s28 + $0x60] ss:$36 sps:$4 sm:$0xff]  }
 0x10d   : > { %2227 = vmatpush1.bf16.msra.mxu1 %v3776_v56  ;;  %2155 = vmatprep.subr.bf16.mxu0 %v3781_v57  ;;  %v3859_v56 = vld [vmem:[%s4468_s28 + $0x254] ss:$36 sps:$4 sm:$0xff]  }
 0x10e   : > { %2228 = vmatprep.subr.bf16.mxu1 %v3784_v58  ;;  %v3857_v57 = vld [vmem:[%s4468_s28 + $0x250] ss:$36 sps:$4 sm:$0xff]   ;;  %v3860_v58 = vld [vmem:[%s4468_s28 + $0x18] ss:$36 sps:$4 sm:$0xff]  }
 0x10f   : > { %2121 = vmatmul.mubr.bf16.gmra.mxu0 %v4699_v60 }
 0x110   : > { %2048 = vmatmul.mubr.bf16.gmra.mxu1 %v4738_v20  ;;  %2156 = vmatpush1.bf16.msra.mxu0 %v3779_v59  ;;  %v3865_v59 = vld [vmem:[%s4468_s28 + $0x454] ss:$36 sps:$4 sm:$0xff]  }
 0x111   : > { %2229 = vmatpush1.bf16.msra.mxu1 %v3782_v61  ;;  %2157 = vmatprep.subr.bf16.mxu0 %v3787_v62  ;;  %v3868_v61 = vld [vmem:[%s4468_s28 + $0x694] ss:$36 sps:$4 sm:$0xff]  }
 0x112   : > { %2230 = vmatprep.subr.bf16.mxu1 %v3790_v63  ;;  %2057 = vmatprep.mubr.bf16.mxu1 %v4747_v25  ;;  %v3863_v62 = vld [vmem:[%s4468_s28 + $0x450] ss:$36 sps:$4 sm:$0xff]  }
 0x113   : > { %2130 = vmatprep.mubr.bf16.mxu0 %v4190_v3  ;;  %v3866_v63 = vld [vmem:[%s4468_s28 + $0x690] ss:$36 sps:$4 sm:$0xff]  }
 0x114   : > { %2158 = vmatpush1.bf16.msra.mxu0 %v3785_v0  ;;  %v3871_v0 = vld [vmem:[%s4468_s28 + $0x40c] ss:$36 sps:$4 sm:$0xff]  }
 0x115   : > { %2231 = vmatpush1.bf16.msra.mxu1 %v3788_v1  ;;  %2159 = vmatprep.subr.bf16.mxu0 %v3793_v2  ;;  %v3874_v1 = vld [vmem:[%s4468_s28 + $0x64c] ss:$36 sps:$4 sm:$0xff]  }
 0x116   : > { %2232 = vmatprep.subr.bf16.mxu1 %v3796_v4  ;;  %v3869_v2 = vld [vmem:[%s4468_s28 + $0x408] ss:$36 sps:$4 sm:$0xff]  }
 0x117   : > { %2131 = vmatmul.mubr.bf16.gmra.mxu0 %v4712_v6  ;;  %v3877_v4 = vld [vmem:[%s4468_s28 + $0x3c4] ss:$36 sps:$4 sm:$0xff]  }
 0x118   : > { %2058 = vmatmul.mubr.bf16.gmra.mxu1 %v4756_v30  ;;  %2160 = vmatpush1.bf16.msra.mxu0 %v3791_v5  ;;  %v3880_v5 = vld [vmem:[%s4468_s28 + $0x604] ss:$36 sps:$4 sm:$0xff]  }
 0x119   : > { %2233 = vmatpush1.bf16.msra.mxu1 %v3794_v7  ;;  %2161 = vmatprep.subr.bf16.mxu0 %v3799_v8  ;;  %v3875_v7 = vld [vmem:[%s4468_s28 + $0x3c0] ss:$36 sps:$4 sm:$0xff]  }
 0x11a   : > { %2234 = vmatprep.subr.bf16.mxu1 %v3802_v10  ;;  %2067 = vmatprep.mubr.bf16.mxu1 %v4763_v35  ;;  %v3878_v8 = vld [vmem:[%s4468_s28 + $0x600] ss:$36 sps:$4 sm:$0xff]  }
 0x11b   : > { %2140 = vmatprep.mubr.bf16.mxu0 %v4190_v3  ;;  %v3883_v10 = vld [vmem:[%s4468_s28 + $0x37c] ss:$36 sps:$4 sm:$0xff]  }
 0x11c   : > { %2162 = vmatpush1.bf16.msra.mxu0 %v3797_v11  ;;  %v3886_v11 = vld [vmem:[%s4468_s28 + $0x5bc] ss:$36 sps:$4 sm:$0xff]  }
 0x11d   : > { %2235 = vmatpush1.bf16.msra.mxu1 %v3800_v12  ;;  %2163 = vmatprep.subr.bf16.mxu0 %v3805_v13  ;;  %v3881_v12 = vld [vmem:[%s4468_s28 + $0x378] ss:$36 sps:$4 sm:$0xff]  }
 0x11e   : > { %2236 = vmatprep.subr.bf16.mxu1 %v3808_v14  ;;  %v3884_v13 = vld [vmem:[%s4468_s28 + $0x5b8] ss:$36 sps:$4 sm:$0xff]  }
 0x11f   : > { %2141 = vmatmul.mubr.bf16.gmra.mxu0 %v4732_v17  ;;  %v3889_v14 = vld [vmem:[%s4468_s28 + $0x334] ss:$36 sps:$4 sm:$0xff]  }
 0x120   : > { %2068 = vmatmul.mubr.bf16.gmra.mxu1 %v4772_v41  ;;  %2164 = vmatpush1.bf16.msra.mxu0 %v3803_v15  ;;  %v3892_v15 = vld [vmem:[%s4468_s28 + $0x574] ss:$36 sps:$4 sm:$0xff]  }
 0x121   : > { %2237 = vmatpush1.bf16.msra.mxu1 %v3806_v18  ;;  %2165 = vmatprep.subr.bf16.mxu0 %v3811_v19  ;;  %v3887_v18 = vld [vmem:[%s4468_s28 + $0x330] ss:$36 sps:$4 sm:$0xff]  }
 0x122   : > { %2238 = vmatprep.subr.bf16.mxu1 %v3814_v21  ;;  %2256 = vmatprep.mubr.bf16.mxu1 %v4190_v3  ;;  %v3890_v19 = vld [vmem:[%s4468_s28 + $0x570] ss:$36 sps:$4 sm:$0xff]  }
 0x123   : > { %2183 = vmatprep.mubr.bf16.mxu0 %v4688_v52  ;;  %v3895_v21 = vld [vmem:[%s4468_s28 + $0x2ec] ss:$36 sps:$4 sm:$0xff]  }
 0x124   : > { %2166 = vmatpush1.bf16.msra.mxu0 %v3809_v22  ;;  %v3898_v22 = vld [vmem:[%s4468_s28 + $0x52c] ss:$36 sps:$4 sm:$0xff]  }
 0x125   : > { %2239 = vmatpush1.bf16.msra.mxu1 %v3812_v23  ;;  %2167 = vmatprep.subr.bf16.mxu0 %v3817_v24  ;;  %v3893_v23 = vld [vmem:[%s4468_s28 + $0x2e8] ss:$36 sps:$4 sm:$0xff]  }
 0x126   : > { %2297 = vmatprep.subr.bf16.mxu1 %v3820_v26  ;;  %v3896_v24 = vld [vmem:[%s4468_s28 + $0x528] ss:$36 sps:$4 sm:$0xff]  }
 0x127   : > { %v3901_v26 = vld [vmem:[%s4468_s28 + $0x2a4] ss:$36 sps:$4 sm:$0xff]  }
 0x128   : > { %2257 = vmatmul.mubr.bf16.vlgmr.msra.gmra.mxu1 %v4668_v36  ;;  %2168 = vmatpush2.bf16.msra.mxu0 %v3815_v27  ;;  %v3835_v36 = vld [vmem:[%s4468_s28 + $0x374] ss:$36 sps:$4 sm:$0xff]   ;;  %v3904_v27 = vld [vmem:[%s4468_s28 + $0x4e4] ss:$36 sps:$4 sm:$0xff]  }
 0x129   : > { %2298 = vmatpush1.bf16.msra.mxu1 %v3818_v28  ;;  %2169 = vmatprep.subr.bf16.mxu0 %v3823_v29  ;;  %v3899_v28 = vld [vmem:[%s4468_s28 + $0x2a0] ss:$36 sps:$4 sm:$0xff]  }
 0x12a   : > { %2299 = vmatprep.subr.bf16.mxu1 %v3826_v31  ;;  %2266 = vmatprep.mubr.bf16.mxu1 %v4190_v3  ;;  %v3902_v29 = vld [vmem:[%s4468_s28 + $0x4e0] ss:$36 sps:$4 sm:$0xff]  }
 0x12b   : > { %v3907_v31 = vld [vmem:[%s4468_s28 + $0x25c] ss:$36 sps:$4 sm:$0xff]  }
 0x12c   : > { %2170 = vmatpush2.bf16.msra.mxu0 %v3821_v32  ;;  %v3910_v32 = vld [vmem:[%s4468_s28 + $0x49c] ss:$36 sps:$4 sm:$0xff]  }
 0x12d   : > { %2300 = vmatpush1.bf16.msra.mxu1 %v3824_v33  ;;  %2171 = vmatprep.subr.bf16.mxu0 %v3829_v34  ;;  %v3905_v33 = vld [vmem:[%s4468_s28 + $0x258] ss:$36 sps:$4 sm:$0xff]  }
 0x12e   : > { %2301 = vmatprep.subr.bf16.mxu1 %v3832_v37  ;;  %v3908_v34 = vld [vmem:[%s4468_s28 + $0x498] ss:$36 sps:$4 sm:$0xff]  }
 0x12f   : > { %v3911_v37 = vld [vmem:[%s4468_s28 + $0x458] ss:$36 sps:$4 sm:$0xff]  }
 0x130   : > { %2267 = vmatmul.mubr.bf16.gmra.mxu1 %v4699_v60  ;;  %2172 = vmatpush2.bf16.msra.mxu0 %v3827_v38  ;;  %v3850_v60 = vld [vmem:[%s4468_s28 + $0xac] ss:$36 sps:$4 sm:$0xff]   ;;  %v3913_v38 = vld [vmem:[%s4468_s28 + $0x698] ss:$36 sps:$4 sm:$0xff]  }
 0x131   : > { %2302 = vmatpush1.bf16.msra.mxu1 %v3830_v39  ;;  %2173 = vmatprep.subr.bf16.mxu0 %v3835_v36  ;;  %v3912_v39 = vld [vmem:[%s4468_s28 + $0x218] ss:$36 sps:$4 sm:$0xff]   ;;  %v3914_v36 = vld [vmem:[%s4468_s28 + $0x410] ss:$36 sps:$4 sm:$0xff]  }
 0x132   : > { %2303 = vmatprep.subr.bf16.mxu1 %v3838_v40  ;;  %2276 = vmatprep.mubr.bf16.mxu1 %v4190_v3  ;;  %v3916_v40 = vld [vmem:[%s4468_s28 + $0x650] ss:$36 sps:$4 sm:$0xff]  }
 0x134   : > { %2174 = vmatpush2.bf16.msra.mxu0 %v3833_v42  ;;  %v4917_v42 = vld [vmem:[%s4460_s4 + $0x8] ss:$12 sps:$4 sm:$0xff]  }
 0x135   : > { %2304 = vmatpush1.bf16.msra.mxu1 %v3836_v43  ;;  %2175 = vmatprep.subr.bf16.mxu0 %v3841_v44  ;;  %v3915_v43 = vld [vmem:[%s4468_s28 + $0x1d0] ss:$36 sps:$4 sm:$0xff]   ;;  %v3917_v44 = vld [vmem:[%s4468_s28 + $0x3c8] ss:$36 sps:$4 sm:$0xff]  }
 0x136   : > { %2305 = vmatprep.subr.bf16.mxu1 %v3844_v45  ;;  %v3919_v45 = vld [vmem:[%s4468_s28 + $0x608] ss:$36 sps:$4 sm:$0xff]  }
 0x138   : > { %2277 = vmatmul.mubr.bf16.gmra.mxu1 %v4712_v6  ;;  %2176 = vmatpush2.bf16.msra.mxu0 %v3839_v46  ;;  %v3862_v6 = vld [vmem:[%s4468_s28 + $0x1c] ss:$36 sps:$4 sm:$0xff]  }
 0x139   : > { %2306 = vmatpush1.bf16.msra.mxu1 %v3842_v47  ;;  %2177 = vmatprep.subr.bf16.mxu0 %v3847_v48  ;;  %v3920_v46 = vld [vmem:[%s4468_s28 + $0x380] ss:$36 sps:$4 sm:$0xff]  }
 0x13a   : > { %2307 = vmatprep.subr.bf16.mxu1 %v3850_v60  ;;  %2286 = vmatprep.mubr.bf16.mxu1 %v4190_v3  ;;  %v3922_v47 = vld [vmem:[%s4468_s28 + $0x5c0] ss:$36 sps:$4 sm:$0xff]   ;;  %v3923_v60 = vld [vmem:[%s4468_s28 + $0x338] ss:$36 sps:$4 sm:$0xff]  }
 0x13b   : > { %v3936_v48 = vld [vmem:[%s4460_s4 + $0x20] ss:$12 sps:$4 sm:$0xff]  }
 0x13c   : > { %2178 = vmatpush2.bf16.msra.mxu0 %v3845_v49  ;;  %v3925_v49 = vld [vmem:[%s4468_s28 + $0x578] ss:$36 sps:$4 sm:$0xff]  }
 0x13d   : > { %2308 = vmatpush1.bf16.msra.mxu1 %v3848_v50  ;;  %2179 = vmatprep.subr.bf16.mxu0 %v3853_v51  ;;  %v3924_v50 = vld [vmem:[%s4468_s28 + $0xf8] ss:$36 sps:$4 sm:$0xff]   ;;  %v3926_v51 = vld [vmem:[%s4468_s28 + $0x2f0] ss:$36 sps:$4 sm:$0xff]  }
 0x13e   : > { %2309 = vmatprep.subr.bf16.mxu1 %v3856_v53  ;;  %v3928_v53 = vld [vmem:[%s4468_s28 + $0x530] ss:$36 sps:$4 sm:$0xff]  }
 0x140   : > { %2287 = vmatmul.mubr.bf16.gmra.mxu1 %v4732_v17  ;;  %2180 = vmatpush2.bf16.msra.mxu0 %v3851_v54  ;;  %v3937_v54 = vld [vmem:[%s4460_s4 + $0x38] ss:$12 sps:$4 sm:$0xff]  }
 0x141   : > { %2310 = vmatpush1.bf16.msra.mxu1 %v3854_v55  ;;  %2181 = vmatprep.subr.bf16.mxu0 %v3859_v56  ;;  %v3927_v55 = vld [vmem:[%s4468_s28 + $0xb0] ss:$36 sps:$4 sm:$0xff]   ;;  %v3929_v56 = vld [vmem:[%s4468_s28 + $0x2a8] ss:$36 sps:$4 sm:$0xff]  }
 0x142   : > { %2311 = vmatprep.subr.bf16.mxu1 %v3862_v6  ;;  %2329 = vmatprep.mubr.bf16.mxu1 %v4688_v52  ;;  %v3872_v52 = vld [vmem:[%s4468_s28 + $0x648] ss:$36 sps:$4 sm:$0xff]  }
 0x143   : > { %v3931_v6 = vld [vmem:[%s4468_s28 + $0x4e8] ss:$36 sps:$4 sm:$0xff]  }
 0x144   : > { %2182 = vmatpush2.bf16.msra.mxu0 %v3857_v57  ;;  %v3930_v57 = vld [vmem:[%s4468_s28 + $0x68] ss:$36 sps:$4 sm:$0xff]  }
 0x145   : > { %2312 = vmatpush1.bf16.msra.mxu1 %v3860_v58  ;;  %2370 = vmatprep.subr.bf16.mxu0 %v3868_v61  ;;  %v3932_v58 = vld [vmem:[%s4468_s28 + $0x260] ss:$36 sps:$4 sm:$0xff]  }
 0x146   : > { %2313 = vmatprep.subr.bf16.mxu1 %v3865_v59  ;;  %v3934_v59 = vld [vmem:[%s4468_s28 + $0x4a0] ss:$36 sps:$4 sm:$0xff]  }
 0x147   : > { %2184 = vmatmul.mubr.bf16.vlgmr.msra.gmra.mxu0 %v4717_v9  ;;  %v3933_v61 = vld [vmem:[%s4468_s28 + $0x20] ss:$36 sps:$4 sm:$0xff]  }
 0x148   : > { %2371 = vmatpush1.bf16.msra.mxu0 %v3866_v63  ;;  %2193 = vmatprep.mubr.bf16.mxu0 %v4728_v16  ;;  %v3940_v63 = vld [vmem:[%s4460_s4 + $0x1c] ss:$12 sps:$4 sm:$0xff]  }
 0x149   : > { %2314 = vmatpush2.bf16.msra.mxu1 %v3863_v62  ;;  %2372 = vmatprep.subr.bf16.mxu0 %v3874_v1  ;;  %v3939_v62 = vld [vmem:[%s4460_s4] ss:$12 sps:$4 sm:$0xff]  }
 0x14a   : > { %2315 = vmatprep.subr.bf16.mxu1 %v3871_v0  ;;  %v3941_v0 = vld [vmem:[%s4460_s4 + $0x50] ss:$12 sps:$4 sm:$0xff]  }
 0x14c   : > { %2373 = vmatpush1.bf16.msra.mxu0 %v3872_v52 }
 0x14d   : > { %2316 = vmatpush2.bf16.msra.mxu1 %v3869_v2  ;;  %2374 = vmatprep.subr.bf16.mxu0 %v3880_v5 }
 0x14e   : > { %2317 = vmatprep.subr.bf16.mxu1 %v3877_v4 }
 0x14f   : > { %2194 = vmatmul.mubr.bf16.gmra.mxu0 %v4738_v20 }
 0x150   : > { %2375 = vmatpush1.bf16.msra.mxu0 %v3878_v8  ;;  %2203 = vmatprep.mubr.bf16.mxu0 %v4747_v25  ;;  %v363_v8 = vld [vmem:[%s4485_s17] sm:$0xff] }
 0x151   : > { %2318 = vmatpush2.bf16.msra.mxu1 %v3875_v7  ;;  %2376 = vmatprep.subr.bf16.mxu0 %v3886_v11 }
 0x152   : > { %2319 = vmatprep.subr.bf16.mxu1 %v3883_v10 }
 0x154   : > { %2377 = vmatpush1.bf16.msra.mxu0 %v3884_v13 }
 0x155   : > { %2320 = vmatpush2.bf16.msra.mxu1 %v3881_v12  ;;  %2378 = vmatprep.subr.bf16.mxu0 %v3892_v15  ;;  %v364_v12 = vld [vmem:[%s4485_s17 + $0x8] sm:$0xff] }
 0x156   : > { %2321 = vmatprep.subr.bf16.mxu1 %v3889_v14 }
 0x157   : > { %2204 = vmatmul.mubr.bf16.gmra.mxu0 %v4756_v30 }
 0x158   : > { %2379 = vmatpush1.bf16.msra.mxu0 %v3890_v19  ;;  %2213 = vmatprep.mubr.bf16.mxu0 %v4763_v35 }
 0x159   : > { %2322 = vmatpush2.bf16.msra.mxu1 %v3887_v18  ;;  %2380 = vmatprep.subr.bf16.mxu0 %v3898_v22 }
 0x15a   : > { %2323 = vmatprep.subr.bf16.mxu1 %v3895_v21  ;;  %v373_v21 = vld [vmem:[%s4485_s17 + $0x50] sm:$0xff] }
 0x15c   : > { %2381 = vmatpush1.bf16.msra.mxu0 %v3896_v24 }
 0x15d   : > { %2324 = vmatpush2.bf16.msra.mxu1 %v3893_v23  ;;  %2382 = vmatprep.subr.bf16.mxu0 %v3904_v27  ;;  %v381_v27 = vld [vmem:[%s4485_s17 + $0x90] sm:$0xff] }
 0x15e   : > { %2325 = vmatprep.subr.bf16.mxu1 %v3901_v26 }
 0x15f   : > { %2214 = vmatmul.mubr.bf16.gmra.mxu0 %v4772_v41 }
 0x160   : > { %2383 = vmatpush1.bf16.msra.mxu0 %v3902_v29  ;;  %2402 = vmatprep.mubr.bf16.mxu0 %v4190_v3 }
 0x161   : > { %2326 = vmatpush2.bf16.msra.mxu1 %v3899_v28  ;;  %2384 = vmatprep.subr.bf16.mxu0 %v3910_v32 }
 0x162   : > { %2327 = vmatprep.subr.bf16.mxu1 %v3907_v31 }
 0x164   : > { %2385 = vmatpush1.bf16.msra.mxu0 %v3908_v34 }
 0x165   : > { %2328 = vmatpush2.bf16.msra.mxu1 %v3905_v33  ;;  %3375 = vmatprep.subr.bf16.mxu0 %v3911_v37  ;;  %v382_v33 = vld [vmem:[%s4485_s17 + $0x98] sm:$0xff] }
 0x166   : > { %3427 = vmatprep.subr.bf16.mxu1 %v3913_v38 }
 0x167   : > { %2403 = vmatmul.mubr.bf16.vlgmr.msra.gmra.mxu0 %v4917_v42 }
 0x168   : > { %2330 = vmatmul.mubr.bf16.vlgmr.msra.gmra.mxu1 %v4717_v9  ;;  %3376 = vmatpush3.bf16.msra.mxu0 %v3912_v39  ;;  %v3918_v9 = vld [vmem:[%s4468_s28 + $0x188] ss:$36 sps:$4 sm:$0xff]  }
 0x169   : > { %3428 = vmatpush3.bf16.msra.mxu1 %v3913_v38  ;;  %3377 = vmatprep.subr.bf16.mxu0 %v3914_v36  ;;  %v390_v39 = vld [vmem:[%s4485_s17 + $0xd8] sm:$0xff] }
 0x16a   : > { %3429 = vmatprep.subr.bf16.mxu1 %v3916_v40  ;;  %2339 = vmatprep.mubr.bf16.mxu1 %v4728_v16  ;;  %v3921_v16 = vld [vmem:[%s4468_s28 + $0x140] ss:$36 sps:$4 sm:$0xff]  }
 0x16b   : > { %2412 = vmatprep.mubr.bf16.mxu0 %v4190_v3 }
 0x16c   : > { %3378 = vmatpush3.bf16.msra.mxu0 %v3915_v43 }
 0x16d   : > { %3430 = vmatpush3.bf16.msra.mxu1 %v3916_v40  ;;  %3379 = vmatprep.subr.bf16.mxu0 %v3917_v44  ;;  %v391_v44 = vld [vmem:[%s4485_s17 + $0xe0] sm:$0xff] }
 0x16e   : > { %3431 = vmatprep.subr.bf16.mxu1 %v3919_v45 }
 0x16f   : > { %2413 = vmatmul.mubr.bf16.gmra.mxu0 %v3936_v48 }
 0x170   : > { %2340 = vmatmul.mubr.bf16.gmra.mxu1 %v4738_v20  ;;  %3380 = vmatpush3.bf16.msra.mxu0 %v3918_v9 }
 0x171   : > { %3432 = vmatpush3.bf16.msra.mxu1 %v3919_v45  ;;  %3381 = vmatprep.subr.bf16.mxu0 %v3920_v46 }
 0x172   : > { %3433 = vmatprep.subr.bf16.mxu1 %v3922_v47  ;;  %2349 = vmatprep.mubr.bf16.mxu1 %v4747_v25 }
 0x173   : > { %2422 = vmatprep.mubr.bf16.mxu0 %v4190_v3 }
 0x174   : > { %3382 = vmatpush3.bf16.msra.mxu0 %v3921_v16 }
 0x175   : > { %3434 = vmatpush3.bf16.msra.mxu1 %v3922_v47  ;;  %3383 = vmatprep.subr.bf16.mxu0 %v3923_v60  ;;  %v399_v47 = vld [vmem:[%s4485_s17 + $0x120] sm:$0xff] }
 0x176   : > { %3435 = vmatprep.subr.bf16.mxu1 %v3925_v49 }
 0x177   : > { %2423 = vmatmul.mubr.bf16.gmra.mxu0 %v3937_v54 }
 0x178   : > { %2350 = vmatmul.mubr.bf16.gmra.mxu1 %v4756_v30  ;;  %3384 = vmatpush3.bf16.msra.mxu0 %v3924_v50  ;;  %v400_v50 = vld [vmem:[%s4485_s17 + $0x128] sm:$0xff] }
 0x179   : > { %3436 = vmatpush3.bf16.msra.mxu1 %v3925_v49  ;;  %3385 = vmatprep.subr.bf16.mxu0 %v3926_v51 }
 0x17a   : > { %3437 = vmatprep.subr.bf16.mxu1 %v3928_v53  ;;  %2359 = vmatprep.mubr.bf16.mxu1 %v4763_v35 }
 0x17b   : > { %2432 = vmatprep.mubr.bf16.mxu0 %v4190_v3  ;;  %v3938_v3 = vld [vmem:[%s4460_s4 + $0x4] ss:$12 sps:$4 sm:$0xff]  }
 0x17c   : > { %3386 = vmatpush3.bf16.msra.mxu0 %v3927_v55  ;;  %v408_v55 = vld [vmem:[%s4485_s17 + $0x168] sm:$0xff] }
 0x17d   : > { %3438 = vmatpush3.bf16.msra.mxu1 %v3928_v53  ;;  %3387 = vmatprep.subr.bf16.mxu0 %v3929_v56 }
 0x17e   : > { %3439 = vmatprep.subr.bf16.mxu1 %v3931_v6 }
 0x17f   : > { %2433 = vmatmul.mubr.bf16.gmra.mxu0 %v4732_v17 }
 0x180   : > { %2360 = vmatmul.mubr.bf16.gmra.mxu1 %v4772_v41  ;;  %3388 = vmatpush3.bf16.msra.mxu0 %v3930_v57 }
 0x181   : > { %3440 = vmatpush3.bf16.msra.mxu1 %v3931_v6  ;;  %3389 = vmatprep.subr.bf16.mxu0 %v3932_v58 }
 0x182   : > { %3441 = vmatprep.subr.bf16.mxu1 %v3934_v59  ;;  %2475 = vmatprep.mubr.bf16.mxu0 %v3938_v3 }
 0x183   : > { %3443 = vmatprep.mubr.bf16.mxu1 %v4917_v42 }
 0x184   : > { %3390 = vmatpush3.bf16.msra.mxu0 %v3933_v61 }
 0x185   : > { %3442 = vmatpush3.bf16.msra.mxu1 %v3934_v59  ;;  %v409_v59 = vld [vmem:[%s4485_s17 + $0x170] sm:$0xff] }
 0x187   : > { %2476 = vmatmul.mubr.bf16.vlgmr.msra.gmra.mxu0 %v3939_v62 }
 0x188   : > { %3444 = vmatmul.mubr.bf16.vlgmr.msra.gmra.mxu1 %v3936_v48  ;;  %2483 = vmatprep.mubr.bf16.mxu0 %v3940_v63  ;;  %v1966_v17 = vpop.f32.mrf.mxu1  ;;  %v417_v63 = vld [vmem:[%s4485_s17 + $0x1b0] sm:$0xff] }
 0x189   : > { %3447 = vmatprep.mubr.bf16.mxu1 %v3937_v54 }
 0x18a   : > { %v1968_v1 = vpop.f32.mrf.mxu1 }
 0x18c   : > { %v1970_v2 = vpop.f32.mrf.mxu1 }
 0x18e   : > { %v1972_v52 = vpop.f32.mrf.mxu1 }
 0x18f   : > { %2484 = vmatmul.mubr.bf16.gmra.mxu0 %v4738_v20 }
 0x190   : > { %3448 = vmatmul.mubr.bf16.gmra.mxu1 %v3941_v0  ;;  %2491 = vmatprep.mubr.bf16.mxu0 %v4747_v25  ;;  %v1976_v4 = vpop.f32.mrf.mxu1 }
 0x192   : > { %v1978_v5 = vpop.f32.mrf.mxu1 }
 0x194   : > { %v1980_v7 = vpop.f32.mrf.mxu1 }
 0x196   : > { %v1982_v20 = vpop.f32.mrf.mxu1 }
 0x197   : > { %2492 = vmatmul.mubr.bf16.gmra.mxu0 %v4756_v30 }
 0x198   : > { %2499 = vmatprep.mubr.bf16.mxu0 %v4763_v35  ;;  %v1986_v11 = vpop.f32.mrf.mxu1  ;;  %v372_v35 = vld [vmem:[%s4485_s17 + $0x48] sm:$0xff] }
 0x19a   : > { %v1988_v18 = vpop.f32.mrf.mxu1 }
 0x19c   : > { %v1990_v28 = vpop.f32.mrf.mxu1 }
 0x19e   : > { %v1992_v36 = vpop.f32.mrf.mxu1 }
 0x19f   : > { %2500 = vmatmul.mubr.bf16.gmra.mxu0 %v4772_v41 }
 0x1a0   : > { %v1996_v48 = vpop.f32.mrf.mxu1 }
 0x1a2   : > { %v1998_v56 = vpop.f32.mrf.mxu1 }
 0x1a7   : > { %v1893_v10 = vpop.f32.mrf.mxu0 }
 0x1a8   : > { %v1967_v25 = vadd.f32 %v1966_v17, %v1893_v10  ;;  %v2000_v17 = vpop.f32.mrf.mxu1 }
 0x1a9   : > { %v1895_v30 = vpop.f32.mrf.mxu0 }
 0x1aa   : > { %v2573_v13 = vadd.f32 %v1967_v25, %v363_v8  ;;  %v1969_v14 = vadd.f32 %v1968_v1, %v1895_v30  ;;  %v2002_v8 = vpop.f32.mrf.mxu1 }
 0x1ab   : > { %v1897_v15 = vpop.f32.mrf.mxu0 }
 0x1ac   : > { %2645 = vst [vmem:[%s4485_s17] sm:$0xff] %v2573_v13  ;;  %v2574_v41 = vadd.f32 %v1969_v14, %v364_v12  ;;  %v1971_v19 = vadd.f32 %v1970_v2, %v1897_v15  ;;  %v427_v12 = vld [vmem:[%s4485_s17 + $0x200] sm:$0xff] }
 0x1ad   : > { %v1899_v22 = vpop.f32.mrf.mxu0 }
 0x1ae   : > { %2646 = vst [vmem:[%s4485_s17 + $0x8] sm:$0xff] %v2574_v41  ;;  %v2582_v23 = vadd.f32 %v1971_v19, %v372_v35  ;;  %v1973_v24 = vadd.f32 %v1972_v52, %v1899_v22  ;;  %v418_v52 = vld [vmem:[%s4485_s17 + $0x1b8] sm:$0xff]  ;;  %v365_v35 = vld [vmem:[%s4485_s17 + $0x10] sm:$0xff] }
 0x1af   : > { %v1903_v26 = vpop.f32.mrf.mxu0 }
 0x1b0   : > { %2654 = vst [vmem:[%s4485_s17 + $0x48] sm:$0xff] %v2582_v23  ;;  %v2583_v29 = vadd.f32 %v1973_v24, %v373_v21  ;;  %v1977_v31 = vadd.f32 %v1976_v4, %v1903_v26  ;;  %v366_v21 = vld [vmem:[%s4485_s17 + $0x18] sm:$0xff] }
 0x1b1   : > { %v1905_v32 = vpop.f32.mrf.mxu0 }
 0x1b2   : > { %2655 = vst [vmem:[%s4485_s17 + $0x50] sm:$0xff] %v2583_v29  ;;  %v2591_v34 = vadd.f32 %v1977_v31, %v381_v27  ;;  %v1979_v37 = vadd.f32 %v1978_v5, %v1905_v32  ;;  %v374_v27 = vld [vmem:[%s4485_s17 + $0x58] sm:$0xff] }
 0x1b3   : > { %v1907_v38 = vpop.f32.mrf.mxu0 }
 0x1b4   : > { %2663 = vst [vmem:[%s4485_s17 + $0x90] sm:$0xff] %v2591_v34  ;;  %v2592_v40 = vadd.f32 %v1979_v37, %v382_v33  ;;  %v1981_v42 = vadd.f32 %v1980_v7, %v1907_v38  ;;  %v375_v33 = vld [vmem:[%s4485_s17 + $0x60] sm:$0xff] }
 0x1b5   : > { %v1909_v43 = vpop.f32.mrf.mxu0 }
 0x1b6   : > { %2664 = vst [vmem:[%s4485_s17 + $0x98] sm:$0xff] %v2592_v40  ;;  %v2600_v45 = vadd.f32 %v1981_v42, %v390_v39  ;;  %v1983_v9 = vadd.f32 %v1982_v20, %v1909_v43  ;;  %v426_v20 = vld [vmem:[%s4485_s17 + $0x1f8] sm:$0xff] }
 0x1b7   : > { %v1913_v46 = vpop.f32.mrf.mxu0 }
 0x1b8   : > { %2672 = vst [vmem:[%s4485_s17 + $0xd8] sm:$0xff] %v2600_v45  ;;  %v2601_v16 = vadd.f32 %v1983_v9, %v391_v44  ;;  %v1987_v60 = vadd.f32 %v1986_v11, %v1913_v46  ;;  %v384_v45 = vld [vmem:[%s4485_s17 + $0xa8] sm:$0xff] }
 0x1b9   : > { %v1915_v49 = vpop.f32.mrf.mxu0 }
 0x1ba   : > { %2673 = vst [vmem:[%s4485_s17 + $0xe0] sm:$0xff] %v2601_v16  ;;  %v2609_v51 = vadd.f32 %v1987_v60, %v399_v47  ;;  %v1989_v53 = vadd.f32 %v1988_v18, %v1915_v49  ;;  %v392_v16 = vld [vmem:[%s4485_s17 + $0xe8] sm:$0xff] }
 0x1bb   : > { %v1917_v54 = vpop.f32.mrf.mxu0 }
 0x1bc   : > { %2681 = vst [vmem:[%s4485_s17 + $0x120] sm:$0xff] %v2609_v51  ;;  %v2610_v6 = vadd.f32 %v1989_v53, %v400_v50  ;;  %v1991_v57 = vadd.f32 %v1990_v28, %v1917_v54  ;;  %v393_v53 = vld [vmem:[%s4485_s17 + $0xf0] sm:$0xff] }
 0x1bd   : > { %v1919_v58 = vpop.f32.mrf.mxu0 }
 0x1be   : > { %2682 = vst [vmem:[%s4485_s17 + $0x128] sm:$0xff] %v2610_v6  ;;  %v2618_v61 = vadd.f32 %v1991_v57, %v408_v55  ;;  %v1993_v3 = vadd.f32 %v1992_v36, %v1919_v58  ;;  %v383_v36 = vld [vmem:[%s4485_s17 + $0xa0] sm:$0xff]  ;;  %v401_v57 = vld [vmem:[%s4485_s17 + $0x130] sm:$0xff] }
 0x1bf   : > { %v1923_v62 = vpop.f32.mrf.mxu0 }
 0x1c0   : > { %2690 = vst [vmem:[%s4485_s17 + $0x168] sm:$0xff] %v2618_v61  ;;  %v2619_v0 = vadd.f32 %v1993_v3, %v409_v59  ;;  %v1997_v1 = vadd.f32 %v1996_v48, %v1923_v62  ;;  %v402_v62 = vld [vmem:[%s4485_s17 + $0x138] sm:$0xff] }
 0x1c1   : > { %v1925_v2 = vpop.f32.mrf.mxu0 }
 0x1c2   : > { %2691 = vst [vmem:[%s4485_s17 + $0x170] sm:$0xff] %v2619_v0  ;;  %v2627_v4 = vadd.f32 %v1997_v1, %v417_v63  ;;  %v1999_v5 = vadd.f32 %v1998_v56, %v1925_v2  ;;  %v410_v2 = vld [vmem:[%s4485_s17 + $0x178] sm:$0xff] }
 0x1c3   : > { %v1927_v7 = vpop.f32.mrf.mxu0 }
 0x1c4   : > { %2699 = vst [vmem:[%s4485_s17 + $0x1b0] sm:$0xff] %v2627_v4  ;;  %v2628_v10 = vadd.f32 %v1999_v5, %v418_v52  ;;  %v2001_v11 = vadd.f32 %v2000_v17, %v1927_v7 }
 0x1c5   : > { %v1929_v25 = vpop.f32.mrf.mxu0 }
 0x1c6   : > { %2700 = vst [vmem:[%s4485_s17 + $0x1b8] sm:$0xff] %v2628_v10  ;;  %v2636_v30 = vadd.f32 %v2001_v11, %v426_v20  ;;  %v2003_v13 = vadd.f32 %v2002_v8, %v1929_v25  ;;  %v411_v20 = vld [vmem:[%s4485_s17 + $0x180] sm:$0xff] }
 0x1c7   : > { %v2112_v15 = vpop.f32.mrf.mxu0 }
 0x1c8   : > { %v2039_v14 = vpop.f32.mrf.mxu1  ;;  %2708 = vst [vmem:[%s4485_s17 + $0x1f8] sm:$0xff] %v2636_v30  ;;  %v2637_v18 = vadd.f32 %v2003_v13, %v427_v12  ;;  %v419_v12 = vld [vmem:[%s4485_s17 + $0x1c0] sm:$0xff] }
 0x1c9   : > { %v2113_v41 = vadd.f32 %v2112_v15, %v2039_v14  ;;  %v2114_v22 = vpop.f32.mrf.mxu0  ;;  %v420_v15 = vld [vmem:[%s4485_s17 + $0x1c8] sm:$0xff] }
 0x1ca   : > { %v2041_v19 = vpop.f32.mrf.mxu1  ;;  %2709 = vst [vmem:[%s4485_s17 + $0x200] sm:$0xff] %v2637_v18 }
 0x1cb   : > { %v2575_v23 = vadd.f32 %v2113_v41, %v365_v35  ;;  %v2115_v24 = vadd.f32 %v2114_v22, %v2041_v19  ;;  %v2116_v28 = vpop.f32.mrf.mxu0  ;;  %v428_v22 = vld [vmem:[%s4485_s17 + $0x208] sm:$0xff] }
 0x1cc   : > { %v2043_v26 = vpop.f32.mrf.mxu1 }
 0x1cd   : > { %2647 = vst [vmem:[%s4485_s17 + $0x10] sm:$0xff] %v2575_v23  ;;  %v2576_v29 = vadd.f32 %v2115_v24, %v366_v21  ;;  %v2117_v31 = vadd.f32 %v2116_v28, %v2043_v26  ;;  %v2118_v34 = vpop.f32.mrf.mxu0  ;;  %v429_v28 = vld [vmem:[%s4485_s17 + $0x210] sm:$0xff] }
 0x1ce   : > { %v2045_v32 = vpop.f32.mrf.mxu1 }
 0x1cf   : > { %2648 = vst [vmem:[%s4485_s17 + $0x18] sm:$0xff] %v2576_v29  ;;  %v2584_v37 = vadd.f32 %v2117_v31, %v374_v27  ;;  %v2119_v38 = vadd.f32 %v2118_v34, %v2045_v32  ;;  %v2122_v40 = vpop.f32.mrf.mxu0 }
 0x1d0   : > { %v2049_v39 = vpop.f32.mrf.mxu1 }
 0x1d1   : > { %2656 = vst [vmem:[%s4485_s17 + $0x58] sm:$0xff] %v2584_v37  ;;  %v2585_v42 = vadd.f32 %v2119_v38, %v375_v33  ;;  %v2123_v43 = vadd.f32 %v2122_v40, %v2049_v39  ;;  %v2124_v9 = vpop.f32.mrf.mxu0 }
 0x1d2   : > { %v2051_v44 = vpop.f32.mrf.mxu1 }
 0x1d3   : > { %2657 = vst [vmem:[%s4485_s17 + $0x60] sm:$0xff] %v2585_v42  ;;  %v2593_v46 = vadd.f32 %v2123_v43, %v383_v36  ;;  %v2125_v47 = vadd.f32 %v2124_v9, %v2051_v44  ;;  %v2126_v60 = vpop.f32.mrf.mxu0  ;;  %v367_v44 = vld [vmem:[%s4485_s17 + $0x20] sm:$0xff] }
 0x1d4   : > { %v2053_v48 = vpop.f32.mrf.mxu1 }
 0x1d5   : > { %2665 = vst [vmem:[%s4485_s17 + $0xa0] sm:$0xff] %v2593_v46  ;;  %v2594_v49 = vadd.f32 %v2125_v47, %v384_v45  ;;  %v2127_v50 = vadd.f32 %v2126_v60, %v2053_v48  ;;  %v2128_v54 = vpop.f32.mrf.mxu0  ;;  %v368_v47 = vld [vmem:[%s4485_s17 + $0x28] sm:$0xff] }
 0x1d6   : > { %v2055_v51 = vpop.f32.mrf.mxu1 }
 0x1d7   : > { %2666 = vst [vmem:[%s4485_s17 + $0xa8] sm:$0xff] %v2594_v49  ;;  %v2602_v55 = vadd.f32 %v2127_v50, %v392_v16  ;;  %v2129_v56 = vadd.f32 %v2128_v54, %v2055_v51  ;;  %v2132_v58 = vpop.f32.mrf.mxu0  ;;  %v376_v49 = vld [vmem:[%s4485_s17 + $0x68] sm:$0xff] }
 0x1d8   : > { %v2059_v6 = vpop.f32.mrf.mxu1 }
 0x1d9   : > { %2674 = vst [vmem:[%s4485_s17 + $0xe8] sm:$0xff] %v2602_v55  ;;  %v2603_v59 = vadd.f32 %v2129_v56, %v393_v53  ;;  %v2133_v61 = vadd.f32 %v2132_v58, %v2059_v6  ;;  %v2134_v63 = vpop.f32.mrf.mxu0  ;;  %v377_v55 = vld [vmem:[%s4485_s17 + $0x70] sm:$0xff] }
 0x1da   : > { %v2061_v3 = vpop.f32.mrf.mxu1 }
 0x1db   : > { %2675 = vst [vmem:[%s4485_s17 + $0xf0] sm:$0xff] %v2603_v59  ;;  %v2611_v17 = vadd.f32 %v2133_v61, %v401_v57  ;;  %v2135_v0 = vadd.f32 %v2134_v63, %v2061_v3  ;;  %v2136_v52 = vpop.f32.mrf.mxu0  ;;  %v385_v59 = vld [vmem:[%s4485_s17 + $0xb0] sm:$0xff] }
 0x1dc   : > { %v2063_v1 = vpop.f32.mrf.mxu1 }
 0x1dd   : > { %2683 = vst [vmem:[%s4485_s17 + $0x130] sm:$0xff] %v2611_v17  ;;  %v2612_v4 = vadd.f32 %v2135_v0, %v402_v62  ;;  %v2137_v5 = vadd.f32 %v2136_v52, %v2063_v1  ;;  %v2138_v8 = vpop.f32.mrf.mxu0  ;;  %v386_v17 = vld [vmem:[%s4485_s17 + $0xb8] sm:$0xff] }
 0x1de   : > { %v2065_v7 = vpop.f32.mrf.mxu1  ;;  %v394_v52 = vld [vmem:[%s4485_s17 + $0xf8] sm:$0xff] }
 0x1df   : > { %2684 = vst [vmem:[%s4485_s17 + $0x138] sm:$0xff] %v2612_v4  ;;  %v2620_v10 = vadd.f32 %v2137_v5, %v410_v2  ;;  %v2139_v11 = vadd.f32 %v2138_v8, %v2065_v7  ;;  %v2142_v30 = vpop.f32.mrf.mxu0  ;;  %v395_v8 = vld [vmem:[%s4485_s17 + $0x100] sm:$0xff] }
 0x1e0   : > { %v2069_v25 = vpop.f32.mrf.mxu1 }
 0x1e1   : > { %2692 = vst [vmem:[%s4485_s17 + $0x178] sm:$0xff] %v2620_v10  ;;  %v2621_v13 = vadd.f32 %v2139_v11, %v411_v20  ;;  %v2143_v14 = vadd.f32 %v2142_v30, %v2069_v25  ;;  %v2144_v18 = vpop.f32.mrf.mxu0 }
 0x1e2   : > { %v2071_v35 = vpop.f32.mrf.mxu1 }
 0x1e3   : > { %2693 = vst [vmem:[%s4485_s17 + $0x180] sm:$0xff] %v2621_v13  ;;  %v2629_v41 = vadd.f32 %v2143_v14, %v419_v12  ;;  %v2145_v19 = vadd.f32 %v2144_v18, %v2071_v35  ;;  %v2146_v23 = vpop.f32.mrf.mxu0  ;;  %v403_v12 = vld [vmem:[%s4485_s17 + $0x140] sm:$0xff] }
 0x1e4   : > { %v2073_v21 = vpop.f32.mrf.mxu1 }
 0x1e5   : > { %2701 = vst [vmem:[%s4485_s17 + $0x1c0] sm:$0xff] %v2629_v41  ;;  %v2630_v24 = vadd.f32 %v2145_v19, %v420_v15  ;;  %v2147_v26 = vadd.f32 %v2146_v23, %v2073_v21  ;;  %v2148_v29 = vpop.f32.mrf.mxu0  ;;  %v404_v15 = vld [vmem:[%s4485_s17 + $0x148] sm:$0xff] }
 0x1e6   : > { %v2075_v27 = vpop.f32.mrf.mxu1  ;;  %v412_v21 = vld [vmem:[%s4485_s17 + $0x188] sm:$0xff] }
 0x1e7   : > { %2702 = vst [vmem:[%s4485_s17 + $0x1c8] sm:$0xff] %v2630_v24  ;;  %v2638_v31 = vadd.f32 %v2147_v26, %v428_v22  ;;  %v2149_v32 = vadd.f32 %v2148_v29, %v2075_v27  ;;  %v413_v27 = vld [vmem:[%s4485_s17 + $0x190] sm:$0xff] }
 0x1e8   : > { %v2258_v34 = vpop.f32.mrf.mxu1 }
 0x1e9   : > { %2710 = vst [vmem:[%s4485_s17 + $0x208] sm:$0xff] %v2638_v31  ;;  %v2639_v33 = vadd.f32 %v2149_v32, %v429_v28  ;;  %v421_v32 = vld [vmem:[%s4485_s17 + $0x1d0] sm:$0xff] }
 0x1ea   : > { %v2260_v37 = vpop.f32.mrf.mxu1 }
 0x1eb   : > { %2711 = vst [vmem:[%s4485_s17 + $0x210] sm:$0xff] %v2639_v33 }
 0x1ec   : > { %v2262_v38 = vpop.f32.mrf.mxu1 }
 0x1ee   : > { %v2264_v39 = vpop.f32.mrf.mxu1 }
 0x1f0   : > { %v2268_v36 = vpop.f32.mrf.mxu1 }
 0x1f2   : > { %v2270_v40 = vpop.f32.mrf.mxu1 }
 0x1f4   : > { %v2272_v42 = vpop.f32.mrf.mxu1 }
 0x1f6   : > { %v2274_v43 = vpop.f32.mrf.mxu1 }
 0x1f8   : > { %v2278_v9 = vpop.f32.mrf.mxu1 }
 0x1fa   : > { %v2280_v51 = vpop.f32.mrf.mxu1 }
 0x1fc   : > { %v2282_v61 = vpop.f32.mrf.mxu1 }
 0x1fe   : > { %v2284_v4 = vpop.f32.mrf.mxu1 }
 0x200   : > { %v2288_v30 = vpop.f32.mrf.mxu1 }
 0x202   : > { %v2290_v22 = vpop.f32.mrf.mxu1 }
 0x204   : > { %v2292_v33 = vpop.f32.mrf.mxu1 }
 0x207   : > { %v2185_v45 = vpop.f32.mrf.mxu0 }
 0x208   : > { %v2259_v46 = vadd.f32 %v2258_v34, %v2185_v45 }
 0x209   : > { %v2187_v48 = vpop.f32.mrf.mxu0 }
 0x20a   : > { %v2577_v16 = vadd.f32 %v2259_v46, %v367_v44  ;;  %v2261_v60 = vadd.f32 %v2260_v37, %v2187_v48  ;;  %v2294_v44 = vpop.f32.mrf.mxu1 }
 0x20b   : > { %v2189_v50 = vpop.f32.mrf.mxu0 }
 0x20c   : > { %2649 = vst [vmem:[%s4485_s17 + $0x20] sm:$0xff] %v2577_v16  ;;  %v2578_v53 = vadd.f32 %v2261_v60, %v368_v47  ;;  %v2263_v54 = vadd.f32 %v2262_v38, %v2189_v50  ;;  %v431_v47 = vld [vmem:[%s4485_s17 + $0x220] sm:$0xff] }
 0x20d   : > { %v2191_v56 = vpop.f32.mrf.mxu0 }
 0x20e   : > { %2650 = vst [vmem:[%s4485_s17 + $0x28] sm:$0xff] %v2578_v53  ;;  %v2586_v6 = vadd.f32 %v2263_v54, %v376_v49  ;;  %v2265_v57 = vadd.f32 %v2264_v39, %v2191_v56  ;;  %v422_v39 = vld [vmem:[%s4485_s17 + $0x1d8] sm:$0xff]  ;;  %v369_v49 = vld [vmem:[%s4485_s17 + $0x30] sm:$0xff] }
 0x20f   : > { %v2195_v58 = vpop.f32.mrf.mxu0 }
 0x210   : > { %2658 = vst [vmem:[%s4485_s17 + $0x68] sm:$0xff] %v2586_v6  ;;  %v2587_v3 = vadd.f32 %v2265_v57, %v377_v55  ;;  %v2269_v62 = vadd.f32 %v2268_v36, %v2195_v58  ;;  %v370_v55 = vld [vmem:[%s4485_s17 + $0x38] sm:$0xff] }
 0x211   : > { %v2197_v63 = vpop.f32.mrf.mxu0 }
 0x212   : > { %2659 = vst [vmem:[%s4485_s17 + $0x70] sm:$0xff] %v2587_v3  ;;  %v2595_v0 = vadd.f32 %v2269_v62, %v385_v59  ;;  %v2271_v1 = vadd.f32 %v2270_v40, %v2197_v63  ;;  %v378_v59 = vld [vmem:[%s4485_s17 + $0x78] sm:$0xff] }
 0x213   : > { %v2199_v2 = vpop.f32.mrf.mxu0 }
 0x214   : > { %2667 = vst [vmem:[%s4485_s17 + $0xb0] sm:$0xff] %v2595_v0  ;;  %v2596_v5 = vadd.f32 %v2271_v1, %v386_v17  ;;  %v2273_v7 = vadd.f32 %v2272_v42, %v2199_v2  ;;  %v379_v17 = vld [vmem:[%s4485_s17 + $0x80] sm:$0xff] }
 0x215   : > { %v2201_v20 = vpop.f32.mrf.mxu0 }
 0x216   : > { %2668 = vst [vmem:[%s4485_s17 + $0xb8] sm:$0xff] %v2596_v5  ;;  %v2604_v10 = vadd.f32 %v2273_v7, %v394_v52  ;;  %v2275_v11 = vadd.f32 %v2274_v43, %v2201_v20  ;;  %v430_v43 = vld [vmem:[%s4485_s17 + $0x218] sm:$0xff] }
 0x217   : > { %v2205_v25 = vpop.f32.mrf.mxu0 }
 0x218   : > { %2676 = vst [vmem:[%s4485_s17 + $0xf8] sm:$0xff] %v2604_v10  ;;  %v2605_v13 = vadd.f32 %v2275_v11, %v395_v8  ;;  %v2279_v14 = vadd.f32 %v2278_v9, %v2205_v25  ;;  %v388_v10 = vld [vmem:[%s4485_s17 + $0xc8] sm:$0xff] }
 0x219   : > { %v2207_v35 = vpop.f32.mrf.mxu0 }
 0x21a   : > { %2677 = vst [vmem:[%s4485_s17 + $0x100] sm:$0xff] %v2605_v13  ;;  %v2613_v18 = vadd.f32 %v2279_v14, %v403_v12  ;;  %v2281_v41 = vadd.f32 %v2280_v51, %v2207_v35  ;;  %v396_v13 = vld [vmem:[%s4485_s17 + $0x108] sm:$0xff] }
 0x21b   : > { %v2209_v19 = vpop.f32.mrf.mxu0 }
 0x21c   : > { %2685 = vst [vmem:[%s4485_s17 + $0x140] sm:$0xff] %v2613_v18  ;;  %v2614_v23 = vadd.f32 %v2281_v41, %v404_v15  ;;  %v2283_v24 = vadd.f32 %v2282_v61, %v2209_v19  ;;  %v397_v41 = vld [vmem:[%s4485_s17 + $0x110] sm:$0xff] }
 0x21d   : > { %v2211_v26 = vpop.f32.mrf.mxu0 }
 0x21e   : > { %2686 = vst [vmem:[%s4485_s17 + $0x148] sm:$0xff] %v2614_v23  ;;  %v2622_v28 = vadd.f32 %v2283_v24, %v412_v21  ;;  %v2285_v29 = vadd.f32 %v2284_v4, %v2211_v26  ;;  %v387_v4 = vld [vmem:[%s4485_s17 + $0xc0] sm:$0xff]  ;;  %v405_v24 = vld [vmem:[%s4485_s17 + $0x150] sm:$0xff] }
 0x21f   : > { %v2215_v31 = vpop.f32.mrf.mxu0 }
 0x220   : > { %2694 = vst [vmem:[%s4485_s17 + $0x188] sm:$0xff] %v2622_v28  ;;  %v2623_v34 = vadd.f32 %v2285_v29, %v413_v27  ;;  %v2289_v37 = vadd.f32 %v2288_v30, %v2215_v31  ;;  %v406_v31 = vld [vmem:[%s4485_s17 + $0x158] sm:$0xff] }
 0x221   : > { %v2217_v38 = vpop.f32.mrf.mxu0 }
 0x222   : > { %2695 = vst [vmem:[%s4485_s17 + $0x190] sm:$0xff] %v2623_v34  ;;  %v2631_v36 = vadd.f32 %v2289_v37, %v421_v32  ;;  %v2291_v40 = vadd.f32 %v2290_v22, %v2217_v38  ;;  %v414_v38 = vld [vmem:[%s4485_s17 + $0x198] sm:$0xff] }
 0x223   : > { %v2219_v42 = vpop.f32.mrf.mxu0 }
 0x224   : > { %2703 = vst [vmem:[%s4485_s17 + $0x1d0] sm:$0xff] %v2631_v36  ;;  %v2632_v45 = vadd.f32 %v2291_v40, %v422_v39  ;;  %v2293_v9 = vadd.f32 %v2292_v33, %v2219_v42 }
 0x225   : > { %v2221_v46 = vpop.f32.mrf.mxu0 }
 0x226   : > { %2704 = vst [vmem:[%s4485_s17 + $0x1d8] sm:$0xff] %v2632_v45  ;;  %v2640_v48 = vadd.f32 %v2293_v9, %v430_v43  ;;  %v2295_v16 = vadd.f32 %v2294_v44, %v2221_v46  ;;  %v415_v43 = vld [vmem:[%s4485_s17 + $0x1a0] sm:$0xff] }
 0x227   : > { %v2404_v50 = vpop.f32.mrf.mxu0 }
 0x228   : > { %v2331_v60 = vpop.f32.mrf.mxu1  ;;  %2712 = vst [vmem:[%s4485_s17 + $0x218] sm:$0xff] %v2640_v48  ;;  %v2641_v51 = vadd.f32 %v2295_v16, %v431_v47  ;;  %v423_v47 = vld [vmem:[%s4485_s17 + $0x1e0] sm:$0xff] }
 0x229   : > { %v2405_v53 = vadd.f32 %v2404_v50, %v2331_v60  ;;  %v2406_v56 = vpop.f32.mrf.mxu0  ;;  %v424_v50 = vld [vmem:[%s4485_s17 + $0x1e8] sm:$0xff] }
 0x22a   : > { %v2333_v54 = vpop.f32.mrf.mxu1  ;;  %2713 = vst [vmem:[%s4485_s17 + $0x220] sm:$0xff] %v2641_v51 }
 0x22b   : > { %v2579_v6 = vadd.f32 %v2405_v53, %v369_v49  ;;  %v2407_v57 = vadd.f32 %v2406_v56, %v2333_v54  ;;  %v2408_v61 = vpop.f32.mrf.mxu0  ;;  %v432_v56 = vld [vmem:[%s4485_s17 + $0x228] sm:$0xff] }
 0x22c   : > { %v2335_v58 = vpop.f32.mrf.mxu1 }
 0x22d   : > { %2651 = vst [vmem:[%s4485_s17 + $0x30] sm:$0xff] %v2579_v6  ;;  %v2580_v3 = vadd.f32 %v2407_v57, %v370_v55  ;;  %v2409_v62 = vadd.f32 %v2408_v61, %v2335_v58  ;;  %v2410_v0 = vpop.f32.mrf.mxu0  ;;  %v433_v61 = vld [vmem:[%s4485_s17 + $0x230] sm:$0xff] }
 0x22e   : > { %v2337_v63 = vpop.f32.mrf.mxu1 }
 0x22f   : > { %2652 = vst [vmem:[%s4485_s17 + $0x38] sm:$0xff] %v2580_v3  ;;  %v2588_v1 = vadd.f32 %v2409_v62, %v378_v59  ;;  %v2411_v2 = vadd.f32 %v2410_v0, %v2337_v63  ;;  %v2414_v5 = vpop.f32.mrf.mxu0 }
 0x230   : > { %v2341_v52 = vpop.f32.mrf.mxu1 }
 0x231   : > { %2660 = vst [vmem:[%s4485_s17 + $0x78] sm:$0xff] %v2588_v1  ;;  %v2589_v7 = vadd.f32 %v2411_v2, %v379_v17  ;;  %v2415_v20 = vadd.f32 %v2414_v5, %v2341_v52  ;;  %v2416_v11 = vpop.f32.mrf.mxu0 }
 0x232   : > { %v2343_v8 = vpop.f32.mrf.mxu1 }
 0x233   : > { %2661 = vst [vmem:[%s4485_s17 + $0x80] sm:$0xff] %v2589_v7  ;;  %v2597_v25 = vadd.f32 %v2415_v20, %v387_v4  ;;  %v2417_v12 = vadd.f32 %v2416_v11, %v2343_v8  ;;  %v2418_v14 = vpop.f32.mrf.mxu0  ;;  %v371_v7 = vld [vmem:[%s4485_s17 + $0x40] sm:$0xff] }
 0x234   : > { %v2345_v30 = vpop.f32.mrf.mxu1 }
 0x235   : > { %2669 = vst [vmem:[%s4485_s17 + $0xc0] sm:$0xff] %v2597_v25  ;;  %v2598_v35 = vadd.f32 %v2417_v12, %v388_v10  ;;  %v2419_v15 = vadd.f32 %v2418_v14, %v2345_v30  ;;  %v2420_v19 = vpop.f32.mrf.mxu0 }
 0x236   : > { %v2347_v18 = vpop.f32.mrf.mxu1 }
 0x237   : > { %2670 = vst [vmem:[%s4485_s17 + $0xc8] sm:$0xff] %v2598_v35  ;;  %v2606_v21 = vadd.f32 %v2419_v15, %v396_v13  ;;  %v2421_v22 = vadd.f32 %v2420_v19, %v2347_v18  ;;  %v2424_v26 = vpop.f32.mrf.mxu0  ;;  %v380_v13 = vld [vmem:[%s4485_s17 + $0x88] sm:$0xff]  ;;  %v389_v19 = vld [vmem:[%s4485_s17 + $0xd0] sm:$0xff] }
 0x238   : > { %v2351_v23 = vpop.f32.mrf.mxu1 }
 0x239   : > { %2678 = vst [vmem:[%s4485_s17 + $0x108] sm:$0xff] %v2606_v21  ;;  %v2607_v27 = vadd.f32 %v2421_v22, %v397_v41  ;;  %v2425_v28 = vadd.f32 %v2424_v26, %v2351_v23  ;;  %v2426_v32 = vpop.f32.mrf.mxu0 }
 0x23a   : > { %v2353_v29 = vpop.f32.mrf.mxu1 }
 0x23b   : > { %2679 = vst [vmem:[%s4485_s17 + $0x110] sm:$0xff] %v2607_v27  ;;  %v2615_v33 = vadd.f32 %v2425_v28, %v405_v24  ;;  %v2427_v34 = vadd.f32 %v2426_v32, %v2353_v29  ;;  %v2428_v39 = vpop.f32.mrf.mxu0  ;;  %v398_v28 = vld [vmem:[%s4485_s17 + $0x118] sm:$0xff] }
 0x23c   : > { %v2355_v37 = vpop.f32.mrf.mxu1 }
 0x23d   : > { %2687 = vst [vmem:[%s4485_s17 + $0x150] sm:$0xff] %v2615_v33  ;;  %v2616_v36 = vadd.f32 %v2427_v34, %v406_v31  ;;  %v2429_v40 = vadd.f32 %v2428_v39, %v2355_v37  ;;  %v2430_v44 = vpop.f32.mrf.mxu0  ;;  %v407_v39 = vld [vmem:[%s4485_s17 + $0x160] sm:$0xff] }
 0x23e   : > { %v2357_v42 = vpop.f32.mrf.mxu1 }
 0x23f   : > { %2688 = vst [vmem:[%s4485_s17 + $0x158] sm:$0xff] %v2616_v36  ;;  %v2624_v45 = vadd.f32 %v2429_v40, %v414_v38  ;;  %v2431_v9 = vadd.f32 %v2430_v44, %v2357_v42  ;;  %v2434_v48 = vpop.f32.mrf.mxu0 }
 0x240   : > { %v2361_v46 = vpop.f32.mrf.mxu1 }
 0x241   : > { %2696 = vst [vmem:[%s4485_s17 + $0x198] sm:$0xff] %v2624_v45  ;;  %v2625_v16 = vadd.f32 %v2431_v9, %v415_v43  ;;  %v2435_v60 = vadd.f32 %v2434_v48, %v2361_v46  ;;  %v2436_v51 = vpop.f32.mrf.mxu0  ;;  %v416_v9 = vld [vmem:[%s4485_s17 + $0x1a8] sm:$0xff] }
 0x242   : > { %v2363_v49 = vpop.f32.mrf.mxu1 }
 0x243   : > { %2697 = vst [vmem:[%s4485_s17 + $0x1a0] sm:$0xff] %v2625_v16  ;;  %v2633_v53 = vadd.f32 %v2435_v60, %v423_v47  ;;  %v2437_v54 = vadd.f32 %v2436_v51, %v2363_v49  ;;  %v2438_v6 = vpop.f32.mrf.mxu0  ;;  %v425_v60 = vld [vmem:[%s4485_s17 + $0x1f0] sm:$0xff] }
 0x244   : > { %v2365_v55 = vpop.f32.mrf.mxu1 }
 0x245   : > { %2705 = vst [vmem:[%s4485_s17 + $0x1e0] sm:$0xff] %v2633_v53  ;;  %v2634_v57 = vadd.f32 %v2437_v54, %v424_v50  ;;  %v2439_v58 = vadd.f32 %v2438_v6, %v2365_v55  ;;  %v2440_v3 = vpop.f32.mrf.mxu0  ;;  %v434_v55 = vld [vmem:[%s4485_s17 + $0x238] sm:$0xff] }
 0x246   : > { %v2367_v59 = vpop.f32.mrf.mxu1 }
 0x247   : > { %2706 = vst [vmem:[%s4485_s17 + $0x1e8] sm:$0xff] %v2634_v57  ;;  %v2642_v62 = vadd.f32 %v2439_v58, %v432_v56  ;;  %v2441_v63 = vadd.f32 %v2440_v3, %v2367_v59  ;;  %v3391_v17 = vpop.f32.mrf.mxu0 }
 0x248   : > { %v3445_v0 = vpop.f32.mrf.mxu1 }
 0x249   : > { %2714 = vst [vmem:[%s4485_s17 + $0x228] sm:$0xff] %v2642_v62  ;;  %v2643_v1 = vadd.f32 %v2441_v63, %v433_v61  ;;  %v3392_v2 = vpop.f32.mrf.mxu0 }
 0x24a   : > { %v2542_v52 = vpop.f32.mrf.mxu1  ;;  %v3393_v4 = vadd.f32 %v3392_v2, %v3391_v17 }
 0x24b   : > { %2715 = vst [vmem:[%s4485_s17 + $0x230] sm:$0xff] %v2643_v1  ;;  %v3394_v5 = vpop.f32.mrf.mxu0 }
 0x24c   : > { %v3446_v20 = vpop.f32.mrf.mxu1  ;;  %v2543_v8 = vadd.f32 %v3393_v4, %v2542_v52 }
 0x24d   : > { %v3395_v10 = vpop.f32.mrf.mxu0 }
 0x24e   : > { %v2545_v11 = vpop.f32.mrf.mxu1  ;;  %v2581_v25 = vadd.f32 %v2543_v8, %v371_v7  ;;  %v3396_v12 = vadd.f32 %v3395_v10, %v3394_v5 }
 0x24f   : > { %v3397_v30 = vpop.f32.mrf.mxu0 }
 0x250   : > { %2653 = vst [vmem:[%s4485_s17 + $0x40] sm:$0xff] %v2581_v25  ;;  %v2546_v14 = vadd.f32 %v3396_v12, %v2545_v11  ;;  %v3449_v15 = vpop.f32.mrf.mxu1 }
 0x251   : > { %v3398_v35 = vpop.f32.mrf.mxu0 }
 0x252   : > { %v2590_v18 = vadd.f32 %v2546_v14, %v380_v13  ;;  %v3399_v41 = vadd.f32 %v3398_v35, %v3397_v30  ;;  %v2558_v24 = vpop.f32.mrf.mxu1 }
 0x253   : > { %v3400_v21 = vpop.f32.mrf.mxu0 }
 0x254   : > { %2662 = vst [vmem:[%s4485_s17 + $0x88] sm:$0xff] %v2590_v18  ;;  %v2551_v22 = vadd.f32 %v3445_v0, %v3399_v41  ;;  %v3450_v33 = vpop.f32.mrf.mxu1 }
 0x255   : > { %v3401_v23 = vpop.f32.mrf.mxu0 }
 0x256   : > { %v2599_v26 = vadd.f32 %v2551_v22, %v389_v19  ;;  %v3402_v27 = vadd.f32 %v3401_v23, %v3400_v21  ;;  %v2561_v42 = vpop.f32.mrf.mxu1 }
 0x257   : > { %v3403_v29 = vpop.f32.mrf.mxu0 }
 0x258   : > { %2671 = vst [vmem:[%s4485_s17 + $0xd0] sm:$0xff] %v2599_v26  ;;  %v2554_v31 = vadd.f32 %v3446_v20, %v3402_v27 }
 0x259   : > { %v3404_v32 = vpop.f32.mrf.mxu0 }
 0x25a   : > { %v2608_v34 = vadd.f32 %v2554_v31, %v398_v28  ;;  %v3405_v37 = vadd.f32 %v3404_v32, %v3403_v29 }
 0x25b   : > { %v3406_v38 = vpop.f32.mrf.mxu0 }
 0x25c   : > { %2680 = vst [vmem:[%s4485_s17 + $0x118] sm:$0xff] %v2608_v34  ;;  %v2559_v36 = vadd.f32 %v3405_v37, %v2558_v24 }
 0x25d   : > { %v3407_v40 = vpop.f32.mrf.mxu0 }
 0x25e   : > { %v2617_v43 = vadd.f32 %v2559_v36, %v407_v39  ;;  %v3408_v44 = vadd.f32 %v3407_v40, %v3406_v38 }
 0x25f   : > { %v3409_v45 = vpop.f32.mrf.mxu0 }
 0x260   : > { %2689 = vst [vmem:[%s4485_s17 + $0x160] sm:$0xff] %v2617_v43  ;;  %v2562_v46 = vadd.f32 %v3408_v44, %v2561_v42 }
 0x261   : > { %v3410_v47 = vpop.f32.mrf.mxu0 }
 0x262   : > { %v2626_v48 = vadd.f32 %v2562_v46, %v416_v9  ;;  %v3411_v16 = vadd.f32 %v3410_v47, %v3409_v45 }
 0x263   : > { %v3412_v49 = vpop.f32.mrf.mxu0 }
 0x264   : > { %2698 = vst [vmem:[%s4485_s17 + $0x1a8] sm:$0xff] %v2626_v48  ;;  %v2567_v50 = vadd.f32 %v3449_v15, %v3411_v16 }
 0x265   : > { %v3413_v51 = vpop.f32.mrf.mxu0 }
 0x266   : > { %v2635_v53 = vadd.f32 %v2567_v50, %v425_v60  ;;  %v3414_v54 = vadd.f32 %v3413_v51, %v3412_v49 }
 0x268   : > { %2707 = vst [vmem:[%s4485_s17 + $0x1f0] sm:$0xff] %v2635_v53  ;;  %v2570_v56 = vadd.f32 %v3450_v33, %v3414_v54  ;;  %2720 = sbr.rel (%p3367_p2) target bundleno = 667 (0x29b), region = 52 }
 0x26a   : > { %v2644_v6 = vadd.f32 %v2570_v56, %v434_v55 }
 0x26c   : > { %2716 = vst [vmem:[%s4485_s17 + $0x238] sm:$0xff] %v2644_v6 }
 0x26d   : > { %v2797_v57 = vlaneseq  ;;  %v2793_v58 = vld [vmem:[%s4478_s9] sm:$0xff]  ;;  %v2721_v61 = vld [vmem:[%s4485_s17] sm:$0xff]  ;;  %v5117_v12 = vld [vmem:[%s4478_s9 + $0x8] ss:$0 sm:$0xff] }
 0x26e   : > { %v2722_v3 = vld [vmem:[%s4485_s17 + $0x8] sm:$0xff]  ;;  %v2723_v62 = vld [vmem:[%s4485_s17 + $0x10] sm:$0xff]  ;;  %v2724_v63 = vld [vmem:[%s4485_s17 + $0x18] sm:$0xff] }
 0x26f   : > { %v2798_v59 = vshrl.u32 %v2797_v57, 7  ;;  %v2725_v52 = vld [vmem:[%s4485_s17 + $0x20] sm:$0xff]  ;;  %v2726_v4 = vld [vmem:[%s4485_s17 + $0x28] sm:$0xff]  ;;  %v2727_v5 = vld [vmem:[%s4485_s17 + $0x30] sm:$0xff] }
 0x270   : > { %v2728_v7 = vld [vmem:[%s4485_s17 + $0x38] sm:$0xff]  ;;  %v2729_v25 = vld [vmem:[%s4485_s17 + $0x40] sm:$0xff]  ;;  %v2730_v30 = vld [vmem:[%s4485_s17 + $0x48] sm:$0xff] }
 0x271   : > { %v2799_v17 = vsub.s32 0, %v2798_v59  ;;  %v2803_v0 = vsub.s32 1, %v2798_v59  ;;  %v2807_v1 = vsub.s32 2, %v2798_v59  ;;  %v2811_v2 = vsub.s32 3, %v2798_v59  ;;  %v2731_v13 = vld [vmem:[%s4485_s17 + $0x50] sm:$0xff]  ;;  %v2732_v14 = vld [vmem:[%s4485_s17 + $0x58] sm:$0xff] }
 0x272   : > { %v2815_v20 = vsub.s32 4, %v2798_v59  ;;  %v2819_v8 = vsub.s32 5, %v2798_v59  ;;  %v2823_v10 = vsub.s32 6, %v2798_v59  ;;  %v2827_v11 = vsub.s32 7, %v2798_v59  ;;  %v2733_v19 = vld [vmem:[%s4485_s17 + $0x60] sm:$0xff]  ;;  %v2734_v21 = vld [vmem:[%s4485_s17 + $0x68] sm:$0xff] }
 0x273   : > { %v5122_v35 = vrot.slane %v2793_v58, %v2799_v17  ;;  %v5124_v15 = vrot.slane %v2793_v58, %v2803_v0  ;;  %v5126_v18 = vrot.slane %v2793_v58, %v2807_v1  ;;  %v5128_v41 = vrot.slane %v2793_v58, %v2811_v2  ;;  %v2735_v22 = vld [vmem:[%s4485_s17 + $0x70] sm:$0xff]  ;;  %v2736_v23 = vld [vmem:[%s4485_s17 + $0x78] sm:$0xff]  ;;  %v2737_v29 = vld [vmem:[%s4485_s17 + $0x80] sm:$0xff] }
 0x274   : > { %v5134_v24 = vrot.slane %v2793_v58, %v2815_v20  ;;  %v5136_v26 = vrot.slane %v2793_v58, %v2819_v8  ;;  %v5138_v27 = vrot.slane %v2793_v58, %v2823_v10  ;;  %v5140_v28 = vrot.slane %v2793_v58, %v2827_v11  ;;  %v2738_v31 = vld [vmem:[%s4485_s17 + $0x88] sm:$0xff]  ;;  %v2739_v32 = vld [vmem:[%s4485_s17 + $0x90] sm:$0xff]  ;;  %v2740_v33 = vld [vmem:[%s4485_s17 + $0x98] sm:$0xff] }
 0x275   : > { %v2842_v34 = vadd.f32 %v5122_v35, %v2721_v61  ;;  %v2843_v37 = vadd.f32 %v5124_v15, %v2722_v3  ;;  %v2844_v38 = vadd.f32 %v5126_v18, %v2723_v62  ;;  %v2845_v39 = vadd.f32 %v5128_v41, %v2724_v63  ;;  %v2741_v36 = vld [vmem:[%s4485_s17 + $0xa0] sm:$0xff]  ;;  %v2742_v40 = vld [vmem:[%s4485_s17 + $0xa8] sm:$0xff]  ;;  %v2743_v42 = vld [vmem:[%s4485_s17 + $0xb0] sm:$0xff] }
 0x276   : > { %v2846_v43 = vadd.f32 %v5134_v24, %v2725_v52  ;;  %v2847_v44 = vadd.f32 %v5136_v26, %v2726_v4  ;;  %v2848_v45 = vadd.f32 %v5138_v27, %v2727_v5  ;;  %v2849_v9 = vadd.f32 %v5140_v28, %v2728_v7  ;;  %v2744_v46 = vld [vmem:[%s4485_s17 + $0xb8] sm:$0xff]  ;;  %v2745_v47 = vld [vmem:[%s4485_s17 + $0xc0] sm:$0xff]  ;;  %v2746_v48 = vld [vmem:[%s4485_s17 + $0xc8] sm:$0xff] }
 0x277   : > { %2914 = vst [vmem:[%s4485_s17] sm:$0xff] %v2842_v34  ;;  %2915 = vst [vmem:[%s4485_s17 + $0x8] sm:$0xff] %v2843_v37  ;;  %v2850_v16 = vadd.f32 %v5117_v12, %v2729_v25  ;;  %v2851_v60 = vadd.f32 %v5122_v35, %v2730_v30  ;;  %v2852_v49 = vadd.f32 %v5124_v15, %v2731_v13  ;;  %v2747_v51 = vld [vmem:[%s4485_s17 + $0xd0] sm:$0xff]  ;;  %v2748_v53 = vld [vmem:[%s4485_s17 + $0xd8] sm:$0xff] }
 0x278   : > { %2916 = vst [vmem:[%s4485_s17 + $0x10] sm:$0xff] %v2844_v38  ;;  %2917 = vst [vmem:[%s4485_s17 + $0x18] sm:$0xff] %v2845_v39  ;;  %v2853_v50 = vadd.f32 %v5126_v18, %v2732_v14  ;;  %v2749_v54 = vld [vmem:[%s4485_s17 + $0xe0] sm:$0xff]  ;;  %v2854_v55 = vadd.f32 %v5128_v41, %v2733_v19  ;;  %v2855_v56 = vadd.f32 %v5134_v24, %v2734_v21  ;;  %v2750_v58 = vld [vmem:[%s4485_s17 + $0xe8] sm:$0xff] }
 0x279   : > { %2918 = vst [vmem:[%s4485_s17 + $0x20] sm:$0xff] %v2846_v43  ;;  %2919 = vst [vmem:[%s4485_s17 + $0x28] sm:$0xff] %v2847_v44  ;;  %v2856_v6 = vadd.f32 %v5136_v26, %v2735_v22  ;;  %v2857_v57 = vadd.f32 %v5138_v27, %v2736_v23  ;;  %v2751_v59 = vld [vmem:[%s4485_s17 + $0xf0] sm:$0xff]  ;;  %v2752_v61 = vld [vmem:[%s4485_s17 + $0xf8] sm:$0xff]  ;;  %v2858_v3 = vadd.f32 %v5140_v28, %v2737_v29 }
 0x27a   : > { %2920 = vst [vmem:[%s4485_s17 + $0x30] sm:$0xff] %v2848_v45  ;;  %2921 = vst [vmem:[%s4485_s17 + $0x38] sm:$0xff] %v2849_v9  ;;  %v2859_v62 = vadd.f32 %v5117_v12, %v2738_v31  ;;  %v2860_v63 = vadd.f32 %v5122_v35, %v2739_v32  ;;  %v2861_v17 = vadd.f32 %v5124_v15, %v2740_v33  ;;  %v2753_v0 = vld [vmem:[%s4485_s17 + $0x100] sm:$0xff]  ;;  %v2754_v1 = vld [vmem:[%s4485_s17 + $0x108] sm:$0xff] }
 0x27b   : > { %2922 = vst [vmem:[%s4485_s17 + $0x40] sm:$0xff] %v2850_v16  ;;  %2923 = vst [vmem:[%s4485_s17 + $0x48] sm:$0xff] %v2851_v60  ;;  %v2755_v2 = vld [vmem:[%s4485_s17 + $0x110] sm:$0xff]  ;;  %v2862_v52 = vadd.f32 %v5126_v18, %v2741_v36  ;;  %v2863_v4 = vadd.f32 %v5128_v41, %v2742_v40  ;;  %v2864_v5 = vadd.f32 %v5134_v24, %v2743_v42  ;;  %v2756_v20 = vld [vmem:[%s4485_s17 + $0x118] sm:$0xff] }
 0x27c   : > { %2924 = vst [vmem:[%s4485_s17 + $0x50] sm:$0xff] %v2852_v49  ;;  %2925 = vst [vmem:[%s4485_s17 + $0x58] sm:$0xff] %v2853_v50  ;;  %v2865_v7 = vadd.f32 %v5136_v26, %v2744_v46  ;;  %v2757_v8 = vld [vmem:[%s4485_s17 + $0x120] sm:$0xff]  ;;  %v2758_v10 = vld [vmem:[%s4485_s17 + $0x128] sm:$0xff]  ;;  %v2866_v11 = vadd.f32 %v5138_v27, %v2745_v47  ;;  %v2867_v25 = vadd.f32 %v5140_v28, %v2746_v48 }
 0x27d   : > { %2926 = vst [vmem:[%s4485_s17 + $0x60] sm:$0xff] %v2854_v55  ;;  %2927 = vst [vmem:[%s4485_s17 + $0x68] sm:$0xff] %v2855_v56  ;;  %v2868_v30 = vadd.f32 %v5117_v12, %v2747_v51  ;;  %v2869_v13 = vadd.f32 %v5122_v35, %v2748_v53  ;;  %v2759_v14 = vld [vmem:[%s4485_s17 + $0x130] sm:$0xff]  ;;  %v2760_v19 = vld [vmem:[%s4485_s17 + $0x138] sm:$0xff]  ;;  %v2870_v22 = vadd.f32 %v5124_v15, %v2749_v54 }
 0x27e   : > { %2928 = vst [vmem:[%s4485_s17 + $0x70] sm:$0xff] %v2856_v6  ;;  %2929 = vst [vmem:[%s4485_s17 + $0x78] sm:$0xff] %v2857_v57  ;;  %v2761_v21 = vld [vmem:[%s4485_s17 + $0x140] sm:$0xff]  ;;  %v2871_v23 = vadd.f32 %v5126_v18, %v2750_v58  ;;  %v2872_v29 = vadd.f32 %v5128_v41, %v2751_v59  ;;  %v2873_v31 = vadd.f32 %v5134_v24, %v2752_v61  ;;  %v2762_v32 = vld [vmem:[%s4485_s17 + $0x148] sm:$0xff] }
 0x27f   : > { %2930 = vst [vmem:[%s4485_s17 + $0x80] sm:$0xff] %v2858_v3  ;;  %2931 = vst [vmem:[%s4485_s17 + $0x88] sm:$0xff] %v2859_v62  ;;  %v2763_v33 = vld [vmem:[%s4485_s17 + $0x150] sm:$0xff]  ;;  %v2764_v34 = vld [vmem:[%s4485_s17 + $0x158] sm:$0xff]  ;;  %v2874_v37 = vadd.f32 %v5136_v26, %v2753_v0  ;;  %v2875_v38 = vadd.f32 %v5138_v27, %v2754_v1  ;;  %v2876_v39 = vadd.f32 %v5140_v28, %v2755_v2 }
 0x280   : > { %2932 = vst [vmem:[%s4485_s17 + $0x90] sm:$0xff] %v2860_v63  ;;  %2933 = vst [vmem:[%s4485_s17 + $0x98] sm:$0xff] %v2861_v17  ;;  %v2877_v36 = vadd.f32 %v5117_v12, %v2756_v20  ;;  %v2765_v40 = vld [vmem:[%s4485_s17 + $0x160] sm:$0xff]  ;;  %v2766_v42 = vld [vmem:[%s4485_s17 + $0x168] sm:$0xff]  ;;  %v2878_v44 = vadd.f32 %v5122_v35, %v2757_v8  ;;  %v2879_v45 = vadd.f32 %v5124_v15, %v2758_v10 }
 0x281   : > { %2934 = vst [vmem:[%s4485_s17 + $0xa0] sm:$0xff] %v2862_v52  ;;  %2935 = vst [vmem:[%s4485_s17 + $0xa8] sm:$0xff] %v2863_v4  ;;  %v2767_v43 = vld [vmem:[%s4485_s17 + $0x170] sm:$0xff]  ;;  %v2880_v9 = vadd.f32 %v5126_v18, %v2759_v14  ;;  %v2881_v46 = vadd.f32 %v5128_v41, %v2760_v19  ;;  %v2768_v47 = vld [vmem:[%s4485_s17 + $0x178] sm:$0xff]  ;;  %v2882_v60 = vadd.f32 %v5134_v24, %v2761_v21 }
 0x282   : > { %2936 = vst [vmem:[%s4485_s17 + $0xb0] sm:$0xff] %v2864_v5  ;;  %2937 = vst [vmem:[%s4485_s17 + $0xb8] sm:$0xff] %v2865_v7  ;;  %v2769_v48 = vld [vmem:[%s4485_s17 + $0x180] sm:$0xff]  ;;  %v2770_v16 = vld [vmem:[%s4485_s17 + $0x188] sm:$0xff]  ;;  %v2883_v49 = vadd.f32 %v5136_v26, %v2762_v32  ;;  %v2884_v50 = vadd.f32 %v5138_v27, %v2763_v33  ;;  %v2885_v51 = vadd.f32 %v5140_v28, %v2764_v34 }
 0x283   : > { %2938 = vst [vmem:[%s4485_s17 + $0xc0] sm:$0xff] %v2866_v11  ;;  %2939 = vst [vmem:[%s4485_s17 + $0xc8] sm:$0xff] %v2867_v25  ;;  %v2771_v53 = vld [vmem:[%s4485_s17 + $0x190] sm:$0xff]  ;;  %v2772_v54 = vld [vmem:[%s4485_s17 + $0x198] sm:$0xff]  ;;  %v2886_v56 = vadd.f32 %v5117_v12, %v2765_v40  ;;  %v2887_v6 = vadd.f32 %v5122_v35, %v2766_v42  ;;  %v2888_v57 = vadd.f32 %v5124_v15, %v2767_v43 }
 0x284   : > { %2940 = vst [vmem:[%s4485_s17 + $0xd0] sm:$0xff] %v2868_v30  ;;  %2941 = vst [vmem:[%s4485_s17 + $0xd8] sm:$0xff] %v2869_v13  ;;  %v2773_v55 = vld [vmem:[%s4485_s17 + $0x1a0] sm:$0xff]  ;;  %v2889_v58 = vadd.f32 %v5126_v18, %v2768_v47  ;;  %v2774_v59 = vld [vmem:[%s4485_s17 + $0x1a8] sm:$0xff]  ;;  %v2890_v62 = vadd.f32 %v5128_v41, %v2769_v48  ;;  %v2891_v63 = vadd.f32 %v5134_v24, %v2770_v16 }
 0x285   : > { %2942 = vst [vmem:[%s4485_s17 + $0xe0] sm:$0xff] %v2870_v22  ;;  %2943 = vst [vmem:[%s4485_s17 + $0xe8] sm:$0xff] %v2871_v23  ;;  %v2775_v61 = vld [vmem:[%s4485_s17 + $0x1b0] sm:$0xff]  ;;  %v2776_v3 = vld [vmem:[%s4485_s17 + $0x1b8] sm:$0xff]  ;;  %v2892_v17 = vadd.f32 %v5136_v26, %v2771_v53  ;;  %v2893_v0 = vadd.f32 %v5138_v27, %v2772_v54  ;;  %v2894_v4 = vadd.f32 %v5140_v28, %v2773_v55 }
 0x286   : > { %2944 = vst [vmem:[%s4485_s17 + $0xf0] sm:$0xff] %v2872_v29  ;;  %2945 = vst [vmem:[%s4485_s17 + $0xf8] sm:$0xff] %v2873_v31  ;;  %v2777_v1 = vld [vmem:[%s4485_s17 + $0x1c0] sm:$0xff]  ;;  %v2778_v2 = vld [vmem:[%s4485_s17 + $0x1c8] sm:$0xff]  ;;  %v2895_v5 = vadd.f32 %v5117_v12, %v2774_v59  ;;  %v2896_v7 = vadd.f32 %v5122_v35, %v2775_v61  ;;  %v2897_v20 = vadd.f32 %v5124_v15, %v2776_v3 }
 0x287   : > { %2946 = vst [vmem:[%s4485_s17 + $0x100] sm:$0xff] %v2874_v37  ;;  %2947 = vst [vmem:[%s4485_s17 + $0x108] sm:$0xff] %v2875_v38  ;;  %v2779_v52 = vld [vmem:[%s4485_s17 + $0x1d0] sm:$0xff]  ;;  %v2780_v8 = vld [vmem:[%s4485_s17 + $0x1d8] sm:$0xff]  ;;  %v2898_v25 = vadd.f32 %v5126_v18, %v2777_v1  ;;  %v2899_v30 = vadd.f32 %v5128_v41, %v2778_v2 }
 0x288   : > { %2948 = vst [vmem:[%s4485_s17 + $0x110] sm:$0xff] %v2876_v39  ;;  %2949 = vst [vmem:[%s4485_s17 + $0x118] sm:$0xff] %v2877_v36  ;;  %v2781_v10 = vld [vmem:[%s4485_s17 + $0x1e0] sm:$0xff]  ;;  %v2782_v11 = vld [vmem:[%s4485_s17 + $0x1e8] sm:$0xff]  ;;  %v2900_v13 = vadd.f32 %v5134_v24, %v2779_v52  ;;  %v2901_v14 = vadd.f32 %v5136_v26, %v2780_v8 }
 0x289   : > { %2950 = vst [vmem:[%s4485_s17 + $0x120] sm:$0xff] %v2878_v44  ;;  %2951 = vst [vmem:[%s4485_s17 + $0x128] sm:$0xff] %v2879_v45  ;;  %v2783_v19 = vld [vmem:[%s4485_s17 + $0x1f0] sm:$0xff]  ;;  %v2784_v21 = vld [vmem:[%s4485_s17 + $0x1f8] sm:$0xff]  ;;  %v2902_v23 = vadd.f32 %v5138_v27, %v2781_v10  ;;  %v2903_v29 = vadd.f32 %v5140_v28, %v2782_v11 }
 0x28a   : > { %2952 = vst [vmem:[%s4485_s17 + $0x130] sm:$0xff] %v2880_v9  ;;  %2953 = vst [vmem:[%s4485_s17 + $0x138] sm:$0xff] %v2881_v46  ;;  %v2785_v22 = vld [vmem:[%s4485_s17 + $0x200] sm:$0xff]  ;;  %v2904_v31 = vadd.f32 %v5117_v12, %v2783_v19  ;;  %v2905_v32 = vadd.f32 %v5122_v35, %v2784_v21  ;;  %v2786_v33 = vld [vmem:[%s4485_s17 + $0x208] sm:$0xff] }
 0x28b   : > { %2954 = vst [vmem:[%s4485_s17 + $0x140] sm:$0xff] %v2882_v60  ;;  %2955 = vst [vmem:[%s4485_s17 + $0x148] sm:$0xff] %v2883_v49  ;;  %v2787_v34 = vld [vmem:[%s4485_s17 + $0x210] sm:$0xff]  ;;  %v2788_v37 = vld [vmem:[%s4485_s17 + $0x218] sm:$0xff]  ;;  %v2906_v38 = vadd.f32 %v5124_v15, %v2785_v22  ;;  %v2907_v39 = vadd.f32 %v5126_v18, %v2786_v33 }
 0x28c   : > { %2956 = vst [vmem:[%s4485_s17 + $0x150] sm:$0xff] %v2884_v50  ;;  %2957 = vst [vmem:[%s4485_s17 + $0x158] sm:$0xff] %v2885_v51  ;;  %v2908_v35 = vadd.f32 %v5128_v41, %v2787_v34  ;;  %v2909_v36 = vadd.f32 %v5134_v24, %v2788_v37  ;;  %v2789_v40 = vld [vmem:[%s4485_s17 + $0x220] sm:$0xff]  ;;  %v2790_v42 = vld [vmem:[%s4485_s17 + $0x228] sm:$0xff] }
 0x28d   : > { %2958 = vst [vmem:[%s4485_s17 + $0x160] sm:$0xff] %v2886_v56  ;;  %2959 = vst [vmem:[%s4485_s17 + $0x168] sm:$0xff] %v2887_v6  ;;  %v2791_v43 = vld [vmem:[%s4485_s17 + $0x230] sm:$0xff]  ;;  %v2910_v15 = vadd.f32 %v5136_v26, %v2789_v40  ;;  %v2911_v18 = vadd.f32 %v5138_v27, %v2790_v42  ;;  %v2792_v44 = vld [vmem:[%s4485_s17 + $0x238] sm:$0xff] }
 0x28e   : > { %2960 = vst [vmem:[%s4485_s17 + $0x170] sm:$0xff] %v2888_v57  ;;  %2961 = vst [vmem:[%s4485_s17 + $0x178] sm:$0xff] %v2889_v58  ;;  %v2912_v41 = vadd.f32 %v5140_v28, %v2791_v43  ;;  %v2913_v24 = vadd.f32 %v5117_v12, %v2792_v44 }
 0x28f   : > { %2962 = vst [vmem:[%s4485_s17 + $0x180] sm:$0xff] %v2890_v62  ;;  %2963 = vst [vmem:[%s4485_s17 + $0x188] sm:$0xff] %v2891_v63 }
 0x290   : > { %2964 = vst [vmem:[%s4485_s17 + $0x190] sm:$0xff] %v2892_v17  ;;  %2965 = vst [vmem:[%s4485_s17 + $0x198] sm:$0xff] %v2893_v0 }
 0x291   : > { %2966 = vst [vmem:[%s4485_s17 + $0x1a0] sm:$0xff] %v2894_v4  ;;  %2967 = vst [vmem:[%s4485_s17 + $0x1a8] sm:$0xff] %v2895_v5 }
 0x292   : > { %2968 = vst [vmem:[%s4485_s17 + $0x1b0] sm:$0xff] %v2896_v7  ;;  %2969 = vst [vmem:[%s4485_s17 + $0x1b8] sm:$0xff] %v2897_v20 }
 0x293   : > { %2970 = vst [vmem:[%s4485_s17 + $0x1c0] sm:$0xff] %v2898_v25  ;;  %2971 = vst [vmem:[%s4485_s17 + $0x1c8] sm:$0xff] %v2899_v30 }
 0x294   : > { %2972 = vst [vmem:[%s4485_s17 + $0x1d0] sm:$0xff] %v2900_v13  ;;  %2973 = vst [vmem:[%s4485_s17 + $0x1d8] sm:$0xff] %v2901_v14 }
 0x295   : > { %2974 = vst [vmem:[%s4485_s17 + $0x1e0] sm:$0xff] %v2902_v23  ;;  %2975 = vst [vmem:[%s4485_s17 + $0x1e8] sm:$0xff] %v2903_v29 }
 0x296   : > { %2976 = vst [vmem:[%s4485_s17 + $0x1f0] sm:$0xff] %v2904_v31  ;;  %2977 = vst [vmem:[%s4485_s17 + $0x1f8] sm:$0xff] %v2905_v32 }
 0x297   : > { %2978 = vst [vmem:[%s4485_s17 + $0x200] sm:$0xff] %v2906_v38  ;;  %2979 = vst [vmem:[%s4485_s17 + $0x208] sm:$0xff] %v2907_v39 }
 0x298   : > { %2980 = vst [vmem:[%s4485_s17 + $0x210] sm:$0xff] %v2908_v35  ;;  %2981 = vst [vmem:[%s4485_s17 + $0x218] sm:$0xff] %v2909_v36 }
 0x299   : > { %2982 = vst [vmem:[%s4485_s17 + $0x220] sm:$0xff] %v2910_v15  ;;  %2983 = vst [vmem:[%s4485_s17 + $0x228] sm:$0xff] %v2911_v18 }
 0x29a   : > { %2984 = vst [vmem:[%s4485_s17 + $0x230] sm:$0xff] %v2912_v41  ;;  %2985 = vst [vmem:[%s4485_s17 + $0x238] sm:$0xff] %v2913_v24 }
 0x29b PF: > { %s5468_s3 = sld [smem:[#allocation15_spill]]  ;;  %s3000_s29 = sshll.u32 %s4485_s17, 4  ;;  %s5349_s29 = int_to_ptr.vmem [resolvable:$true] %s3000_s29 }
 0x29c   : > { %s5469_s15 = sld [smem:[#allocation23_spill]]  ;;  %s2987_s0 = scalar_lea.sflag [#allocation4], %s4475_s10 }
 0x29d   : > { %s4026_s21 = scalar_lea.vmem %s5349_s29, 9216  ;;  %s4191_s24 = smov [#allocation8]  }
 0x29e   : > { %p4027_p1 = scmp.ne.s32.totalorder %s5349_s29, %s4026_s21  ;;  %s4030_s28 = sshll.u32 %s4191_s24, 4  ;;  %s4031_s28 = int_to_ptr.vmem [resolvable:$false] %s4030_s28 }
 0x29f   : > { %s4032_s30 = scalar_lea.vmem %s4031_s28, 18432  ;;  %p4033_p3 = scmp.lt.s32.totalorder %s5349_s29, %s4031_s28 }
 0x2a0   : > { %p4028_p11 = pnand %p4027_p1, %p4428_p0  ;;  %p4034_p7 = scmp.lt.s32.totalorder %s4032_s30, %s4026_s21 }
 0x2a1   : > { %s3374_s18 = smul.u32 1152, %s5468_s3 }
 0x2a2   : > { %s5470_s4 = smov %s5469_s15  ;;  %p4029_p6 = pneg %p4028_p11 }
 0x2a3   : > { %s5347_s23 = scalar_lea.hbm %s5469_s15, %s3374_s18  ;;  %p4035_p12 = por %p4034_p7, %p4033_p3 }
 0x2a5   : > { %p4036_p8 = pnand %p4035_p12, %p4029_p6 }
 0x2a7   : > { %4039 = shalt.err (!%p4036_p8)
}
 0x2a8   : > { %s4040_s9 = scalar_lea.hbm %s5347_s23, 9216  ;;  %s4044_s5 = scalar_lea.hbm %s5470_s4, 18432 }
 0x2a9   : > { %p4041_p10 = scmp.ne.s32.totalorder %s5347_s23, %s4040_s9  ;;  %p4045_p5 = scmp.lt.s32.totalorder %s5347_s23, %s5470_s4 }
 0x2aa   : > { %p4046_p9 = scmp.lt.s32.totalorder %s4044_s5, %s4040_s9 }
 0x2ab   : > { %p4042_p4 = pnand %p4041_p10, %p4428_p0 }
 0x2ac   : > { %p4047_p2 = por %p4046_p9, %p4045_p5 }
 0x2ad   : > { %p4043_p13 = pneg %p4042_p4 }
 0x2af   : > { %p4048_p1 = pnand %p4047_p2, %p4043_p13 }
 0x2b1   : > { %4051 = shalt.err (!%p4048_p1)
}
 0x2b2   : > { %s4192_s18 = smov 1152   ;;  %s4193_s22 = smov 2304  }
 0x2b3   : > { %s4194_s26 = smov 72  }
 0x2b4   : > { %3465 = dma.vmem_to_hbm [thread:$0]  (%p4428_p0), %s5349_s29, 9216, %s5347_s23, %s2987_s0, %s4192_s18, %s4193_s22, %s4194_s26  }
 0x2b5 PF: > { %p3483_p11 = scmp.ge.s32.totalorder %s4178_s25, 2  ;;  %s3015_s15 = sand.u32 1, %s4126_s12  }
 0x2b6   : > { %p5471_p6 = scmp.ne.s32.totalorder %s5462_s1, 0  ;;  %s3016_s21 = scalar_lea.sflag [#allocation4], %s3015_s15 }
 0x2b8   : > { %p3478_p3 = pnand %p3483_p11, %p5471_p6 }
 0x2ba   : > { %p3479_p7 = pneg %p3478_p3 }
 0x2bc   : > { %4121 = dma.done.wait (%p3479_p7), %s3016_s21, 9216  }
 0x2bd   : > { %4123 = vsyncadd (%p3479_p7), %s3016_s21, 4294958080  ;;  %s22_s25 = sadd.s32 1, %s4178_s25   ;;  %s5473_s6 = sld [smem:[#allocation13_spill]] }
 0x2be   : > { %p5379_p12 = scmp.ge.s32.totalorder %s22_s25, 6   ;;  %s5474_s21 = sld [smem:[#allocation16_spill]] }
 0x2bf   : > { %s5475_s22 = sld [smem:[#allocation17_spill]]  ;;  %s5479_s12 = smov %s4130_s13 }
 0x2c0   : > { %s5476_s23 = sld [smem:[#allocation18_spill]]  ;;  %s5480_s13 = smov %s4134_s14 }
 0x2c1   : > { %s5477_s1 = sld [smem:[#allocation19_spill]]  ;;  %s5481_s14 = smov %s4418_s2 }
 0x2c2   : > { %s5482_s15 = smov %s4142_s16  ;;  %s5484_s17 = smov %s5496_s11 }
 0x2c3   : > { %s5483_s16 = smov %s5473_s6  ;;  %s5485_s18 = smov %s4154_s19 }
 0x2c4   : > { %s5486_s19 = smov %s4158_s20  ;;  %s5487_s20 = smov %s4343_s8 }
 0x2c5   :  { %21 = sbr.rel (!%p5379_p12) target bundleno = 17 (0x11), region = 109 }
 0x2c7   : > { %s5488_s24 = smov %s5477_s1 }
 0x2ca   :  { %3021 = vsyncpa [#allocation3], 1 }
 0x2cb   :  { %3023 = vsyncpa [#allocation3 + $0x1], 1 }
 0x2cc   :  { %3024 = vsyncpa [#allocation6], 1 }
 0x2cd   :  { %3026 = vsyncpa [#allocation6 + $0x1], 1 }
 0x2ce   :  { %3027 = vsyncpa [#allocation4], 1 }
 0x2cf   :  { %3029 = vsyncpa [#allocation4 + $0x1], 1 }

</bundles_post_ra>
